<compile_context>
chip_gen: v7x
topology: tpu7x:2x2x1
jax: 0.10.0
libtpu: 0.0.40
codegen_flags: <defaults>
</compile_context>

<pallas_src>
import functools
import math

import jax
import jax.numpy as jnp
from jax.experimental import pallas as pl
from jax.experimental.pallas import tpu as pltpu


def _round_up(x, m):
    return ((x + m - 1) // m) * m


def _lcm(a, b):
    return a * b // math.gcd(a, b)


@functools.lru_cache(maxsize=1)
def _complex_layout():
    """How to view complex64 as interleaved f32 pairs.

    Returns (mode, real_first): mode is "bitcast" (zero-copy view) or "stack"
    (single fused interleave pass); real_first says whether the f32 pair comes
    out as [real, imag] (expected on TPU little-endian) or [imag, real].
    """
    try:
        p = jax.lax.bitcast_convert_type(
            jnp.array([1.0 + 2.0j], jnp.complex64), jnp.float32)
        p = jax.device_get(p).reshape(-1)
        if float(p[0]) == 1.0 and float(p[1]) == 2.0:
            return "bitcast", True
        if float(p[0]) == 2.0 and float(p[1]) == 1.0:
            return "bitcast", False
    except Exception:
        pass
    return "stack", True


def _interleaved_view(x_c64, rows, ni, mode):
    """complex64 [..., ni] -> f32 [rows, 2*ni] with real/imag interleaved."""
    if mode == "bitcast":
        y = jax.lax.bitcast_convert_type(x_c64, jnp.float32)      # (..., ni, 2)
    else:
        y = jnp.stack([jnp.real(x_c64), jnp.imag(x_c64)], axis=-1)  # one fused pass
    return y.reshape(rows, 2 * ni)


def _cmlp_kernel(x_ref, w1_ref, b1_ref, w2_ref, b2_ref, w3_ref, b3_ref, out_ref):
    # Row-group-packed layout: lanes hold `g` independent rows side by side and
    # the weights are block-diagonal kron(I_g, W), so each dot evaluates g
    # independent row-MLPs at once with lane-dense vregs.
    x = x_ref[...].astype(w1_ref.dtype)            # no-op in f32; VPU cast in bf16 mode
    h = jnp.dot(x, w1_ref[...], preferred_element_type=jnp.float32) + b1_ref[...]
    h = jnp.maximum(h, 0.0)
    # Dropout(p=0.2) -> identity in eval mode.
    h = h.astype(w2_ref.dtype)
    h = jnp.dot(h, w2_ref[...], preferred_element_type=jnp.float32) + b2_ref[...]
    h = jnp.maximum(h, 0.0)
    h = h.astype(w3_ref.dtype)
    o = jnp.dot(h, w3_ref[...], preferred_element_type=jnp.float32) + b3_ref[...]
    out_ref[...] = o.astype(out_ref.dtype)


def complex_mlp_forward(x_complex, params, *, compute_dtype=jnp.float32,
                        out_dtype=jnp.float32, tile_rows=16384, group=None):
    """ComplexMLP forward.  x_complex: complex array of shape [..., num_inputs]."""
    w1, b1, w2, b2, w3, b3 = params
    w1 = jnp.asarray(w1)
    w2 = jnp.asarray(w2)
    w3 = jnp.asarray(w3)
    ni = x_complex.shape[-1]
    nh = w1.shape[1]
    no = w3.shape[1]
    assert w1.shape[0] == 2 * ni, (w1.shape, ni)

    lead = x_complex.shape[:-1]
    rows = int(math.prod(lead)) if lead else 1

    # ---- zero-copy complex64 -> interleaved f32 [r0, i0, r1, i1, ...] --------
    mode, real_first = _complex_layout()
    xc = x_complex.astype(jnp.complex64)
    x_il = _interleaved_view(xc, rows, ni, mode)

    # ---- row-group lane packing ----------------------------------------------
    # Pack g rows per "super-row" so input/hidden/output lane widths become
    # (multiples of) 128: lane-dense DMA buffers and stores, fewer MXU pushes.
    if group is None:
        def dg(w):  # smallest q with q*w % 128 == 0
            return 128 // math.gcd(128, int(w))
        g = _lcm(_lcm(dg(2 * ni), dg(nh)), dg(no))
        g = max(8, min(g, 64, max(8, 2048 // max(2 * ni, nh, no))))
    else:
        g = max(1, int(group))

    rows_p = _round_up(rows, g)
    if rows_p != rows:
        # Only the group-ragged case pays a pad copy; aligned inputs stay copy-free.
        x_il = jnp.pad(x_il, ((0, rows_p - rows), (0, 0)))
    G = rows_p // g
    x_p = x_il.reshape(G, g * 2 * ni)              # free row-major reshape

    # ---- packed weights / biases (small, computed once, VMEM-resident) -------
    op_dtype = jnp.dtype(compute_dtype)
    w1_parts = (w1[:ni], w1[ni:]) if real_first else (w1[ni:], w1[:ni])
    w1_il = jnp.stack(w1_parts, axis=1).reshape(2 * ni, nh)   # rows interleaved
    eye = jnp.eye(g, dtype=jnp.float32)
    w1p = jnp.kron(eye, w1_il.astype(jnp.float32)).astype(op_dtype)
    w2p = jnp.kron(eye, w2.astype(jnp.float32)).astype(op_dtype)
    w3p = jnp.kron(eye, w3.astype(jnp.float32)).astype(op_dtype)
    b1p = jnp.tile(jnp.asarray(b1, jnp.float32).reshape(1, nh), (1, g))
    b2p = jnp.tile(jnp.asarray(b2, jnp.float32).reshape(1, nh), (1, g))
    b3p = jnp.tile(jnp.asarray(b3, jnp.float32).reshape(1, no), (1, g))

    w_in, w_hid, w_out = g * 2 * ni, g * nh, g * no
    out_dt = jnp.dtype(out_dtype)

    # ---- row tiling: big tiles amortize the ~0.35us per-grid-step overhead ----
    tg = max(8, _round_up(max(1, tile_rows // g), 8))   # groups per grid step

    def vmem_bytes(t):  # conservative: weights counted as double-buffered
        return (2 * t * w_in * 4                              # packed x, 2 buffers
                + 2 * t * w_out * out_dt.itemsize             # packed out, 2 buffers
                + 2 * (w1p.size + w2p.size + w3p.size) * op_dtype.itemsize
                + 2 * (b1p.size + b2p.size + b3p.size) * 4
                + 3 * t * w_hid * 4 + t * w_in * 4)           # in-kernel intermediates

    # Stay well under a 32 MiB scoped-VMEM limit: safe on v7x (64 MiB physical)
    # as well as v5e/v6e (128 MiB).  Lane-dense packing is what keeps large row
    # tiles this cheap; the HBM roofline is reached before bigger tiles help.
    while tg > 8 and vmem_bytes(tg) > 20 * 1024 * 1024:
        tg = max(8, tg // 2)
    tg = max(8, (tg // 8) * 8)
    if tg >= G:
        tg = G                                     # single, full-extent block
    n_blocks = pl.cdiv(G, tg)                      # ragged last block -> Pallas masks

    def full(arr):
        return pl.BlockSpec(arr.shape, lambda *_: (0,) * arr.ndim)

    def nbytes(a):
        return a.size * a.dtype.itemsize

    cost = pl.CostEstimate(
        flops=2 * rows_p * g * (2 * ni * nh + nh * nh + nh * no),
        transcendentals=0,
        bytes_accessed=(nbytes(x_p) + G * w_out * out_dt.itemsize
                        + nbytes(w1p) + nbytes(w2p) + nbytes(w3p)
                        + nbytes(b1p) + nbytes(b2p) + nbytes(b3p)),
    )

    out_p = pl.pallas_call(
        _cmlp_kernel,
        out_shape=jax.ShapeDtypeStruct((G, w_out), out_dt),
        grid=(n_blocks,),
        in_specs=[
            pl.BlockSpec((tg, w_in), lambda i: (i, 0)),   # packed x (pipelined)
            full(w1p), full(b1p),                         # VMEM-resident weights
            full(w2p), full(b2p),
            full(w3p), full(b3p),
        ],
        out_specs=pl.BlockSpec((tg, w_out), lambda i: (i, 0)),
        compiler_params=pltpu.CompilerParams(
            # Rows are independent -> shard the row grid across TCs on v7x
            # (no-op on single-TC v5e/v6e).
            dimension_semantics=("parallel",),
            vmem_limit_bytes=32 * 1024 * 1024,
        ),
        cost_estimate=cost,
    )(x_p, w1p, b1p, w2p, b2p, w3p, b3p)

    # Packed output IS the row-major view of (rows_p, no): un-pack for free.
    out2d = out_p.reshape(rows_p, no)
    if rows_p != rows:
        out2d = out2d[:rows]
    return out2d.reshape(*lead, no)


def init_params(key, num_inputs, num_outputs, num_hidden=64):
    """Deterministic init mimicking PyTorch nn.Linear default (U[-1/sqrt(fan_in), +])."""
    def linear(k, fan_in, fan_out):
        kw, kb = jax.random.split(k)
        bound = 1.0 / math.sqrt(fan_in)
        # Stored as [in, out] (transposed relative to PyTorch's [out, in]).
        w = jax.random.uniform(kw, (fan_in, fan_out), jnp.float32, -bound, bound)
        b = jax.random.uniform(kb, (1, fan_out), jnp.float32, -bound, bound)
        return w, b

    k1, k2, k3 = jax.random.split(key, 3)
    w1, b1 = linear(k1, num_inputs * 2, num_hidden)
    w2, b2 = linear(k2, num_hidden, num_hidden)
    w3, b3 = linear(k3, num_hidden, num_outputs)
    return (w1, b1, w2, b2, w3, b3)


def _reference(x_complex, params):
    w1, b1, w2, b2, w3, b3 = params
    x_h = jnp.concatenate([jnp.real(x_complex), jnp.imag(x_complex)], axis=-1)
    h = jnp.maximum(x_h @ w1 + b1, 0.0)
    h = jnp.maximum(h @ w2 + b2, 0.0)
    return h @ w3 + b3


if __name__ == "__main__":
    # Small shapes consistent with the module: batch=2, seq=8, num_inputs=8,
    # num_hidden=32, num_outputs=8.
    num_inputs, num_outputs, num_hidden = 8, 8, 32
    batch, seq = 2, 8

    key = jax.random.PRNGKey(0)
    kx_r, kx_i, kb_r, kb_i, kp = jax.random.split(key, 5)

    x = (jax.random.normal(kx_r, (batch, seq, num_inputs), jnp.float32)
         + 1j * jax.random.normal(kx_i, (batch, seq, num_inputs), jnp.float32)
         ).astype(jnp.complex64)

    params = init_params(kp, num_inputs, num_outputs, num_hidden)
    ref = _reference(x, params)

    # 1) f32, small input (single grid step), under jit so the bitcast/reshape
    #    input view stays copy-free.
    fwd = jax.jit(lambda a, p: complex_mlp_forward(a, p))
    out = jax.block_until_ready(fwd(x, params))
    assert out.shape == (batch, seq, num_outputs), out.shape
    assert jnp.allclose(out, ref, atol=1e-5, rtol=1e-5), "mismatch vs reference (f32)"

    # 2) Large ragged row count + small forced tile: multi-step pipelined grid,
    #    ragged final block, and the group-pad path (1000 % 16 != 0).
    xb = (jax.random.normal(kb_r, (1000, num_inputs), jnp.float32)
          + 1j * jax.random.normal(kb_i, (1000, num_inputs), jnp.float32)
          ).astype(jnp.complex64)
    ref_b = _reference(xb, params)
    fwd_tiled = jax.jit(lambda a, p: complex_mlp_forward(a, p, tile_rows=256))
    out_b = jax.block_until_ready(fwd_tiled(xb, params))
    assert jnp.allclose(out_b, ref_b, atol=1e-5, rtol=1e-5), "mismatch (tiled/ragged)"

    # 3) Rows smaller than one lane-pack group (3*5 = 15 rows -> padded to 16).
    x_odd = x.reshape(-1, num_inputs)[:15].reshape(3, 5, num_inputs)
    ref_odd = _reference(x_odd, params)
    out_odd = jax.block_until_ready(complex_mlp_forward(x_odd, params))
    assert jnp.allclose(out_odd, ref_odd, atol=1e-5, rtol=1e-5), "mismatch (odd rows)"

    # 4) bf16 operand path (x stays f32 in HBM; cast happens inside the kernel),
    #    f32 accumulation.
    out_bf16 = jax.block_until_ready(
        complex_mlp_forward(x, params, compute_dtype=jnp.bfloat16))
    assert jnp.allclose(out_bf16, ref, atol=1e-1, rtol=1e-1), "mismatch (bf16)"

    print("KERNEL_OK")
</pallas_src>

<mosaic_0001>
module attributes {stable_mosaic.version = 11 : i64} {
  func.func @_cmlp_kernel(%arg0: i32, %arg1: memref<1x256xf32, #tpu.memory_space<vmem>>, %arg2: memref<256x512xf32, #tpu.memory_space<vmem>>, %arg3: memref<1x512xf32, #tpu.memory_space<vmem>>, %arg4: memref<512x512xf32, #tpu.memory_space<vmem>>, %arg5: memref<1x512xf32, #tpu.memory_space<vmem>>, %arg6: memref<512x128xf32, #tpu.memory_space<vmem>>, %arg7: memref<1x128xf32, #tpu.memory_space<vmem>>, %arg8: memref<1x128xf32, #tpu.memory_space<vmem>>) attributes {dimension_semantics = [#tpu.dimension_semantics<parallel>], iteration_bounds = array<i64: 1>, scalar_prefetch = 0 : i64, scratch_operands = 0 : i64, tpu.core_type = #tpu.core_type<tc>, window_params = [{transform_indices = @transform_0, window_bounds = array<i64: 1, 256>}, {pipeline_mode = #tpu.pipeline_mode<synchronous>, transform_indices = @transform_1, window_bounds = array<i64: 256, 512>}, {pipeline_mode = #tpu.pipeline_mode<synchronous>, transform_indices = @transform_2, window_bounds = array<i64: 1, 512>}, {pipeline_mode = #tpu.pipeline_mode<synchronous>, transform_indices = @transform_3, window_bounds = array<i64: 512, 512>}, {pipeline_mode = #tpu.pipeline_mode<synchronous>, transform_indices = @transform_4, window_bounds = array<i64: 1, 512>}, {pipeline_mode = #tpu.pipeline_mode<synchronous>, transform_indices = @transform_5, window_bounds = array<i64: 512, 128>}, {pipeline_mode = #tpu.pipeline_mode<synchronous>, transform_indices = @transform_6, window_bounds = array<i64: 1, 128>}, {transform_indices = @transform_7, window_bounds = array<i64: 1, 128>}]} {
    %c0 = arith.constant 0 : index
    %c0_0 = arith.constant 0 : index
    %0 = vector.load %arg1[%c0, %c0_0] : memref<1x256xf32, #tpu.memory_space<vmem>>, vector<1x256xf32>
    %c0_1 = arith.constant 0 : index
    %c0_2 = arith.constant 0 : index
    %1 = vector.load %arg2[%c0_1, %c0_2] : memref<256x512xf32, #tpu.memory_space<vmem>>, vector<256x512xf32>
    %cst = arith.constant dense<0.000000e+00> : vector<1x512xf32>
    %2 = tpu.matmul %0, %1, %cst {dimension_numbers = #tpu.dot_dimension_numbers<[1], [0], [0], [1], [0, 0, 1, 1], [], []>} : vector<1x256xf32>, vector<256x512xf32>, vector<1x512xf32> -> vector<1x512xf32>
    %c0_3 = arith.constant 0 : index
    %c0_4 = arith.constant 0 : index
    %3 = vector.load %arg3[%c0_3, %c0_4] : memref<1x512xf32, #tpu.memory_space<vmem>>, vector<1x512xf32>
    %4 = arith.addf %2, %3 : vector<1x512xf32>
    %cst_5 = arith.constant 0.000000e+00 : f32
    %5 = vector.broadcast %cst_5 : f32 to vector<1x512xf32>
    %6 = arith.maximumf %4, %5 : vector<1x512xf32>
    %c0_6 = arith.constant 0 : index
    %c0_7 = arith.constant 0 : index
    %7 = vector.load %arg4[%c0_6, %c0_7] : memref<512x512xf32, #tpu.memory_space<vmem>>, vector<512x512xf32>
    %cst_8 = arith.constant dense<0.000000e+00> : vector<1x512xf32>
    %8 = tpu.matmul %6, %7, %cst_8 {dimension_numbers = #tpu.dot_dimension_numbers<[1], [0], [0], [1], [0, 0, 1, 1], [], []>} : vector<1x512xf32>, vector<512x512xf32>, vector<1x512xf32> -> vector<1x512xf32>
    %c0_9 = arith.constant 0 : index
    %c0_10 = arith.constant 0 : index
    %9 = vector.load %arg5[%c0_9, %c0_10] : memref<1x512xf32, #tpu.memory_space<vmem>>, vector<1x512xf32>
    %10 = arith.addf %8, %9 : vector<1x512xf32>
    %cst_11 = arith.constant 0.000000e+00 : f32
    %11 = vector.broadcast %cst_11 : f32 to vector<1x512xf32>
    %12 = arith.maximumf %10, %11 : vector<1x512xf32>
    %c0_12 = arith.constant 0 : index
    %c0_13 = arith.constant 0 : index
    %13 = vector.load %arg6[%c0_12, %c0_13] : memref<512x128xf32, #tpu.memory_space<vmem>>, vector<512x128xf32>
    %cst_14 = arith.constant dense<0.000000e+00> : vector<1x128xf32>
    %14 = tpu.matmul %12, %13, %cst_14 {dimension_numbers = #tpu.dot_dimension_numbers<[1], [0], [0], [1], [0, 0, 1, 1], [], []>} : vector<1x512xf32>, vector<512x128xf32>, vector<1x128xf32> -> vector<1x128xf32>
    %c0_15 = arith.constant 0 : index
    %c0_16 = arith.constant 0 : index
    %15 = vector.load %arg7[%c0_15, %c0_16] : memref<1x128xf32, #tpu.memory_space<vmem>>, vector<1x128xf32>
    %16 = arith.addf %14, %15 : vector<1x128xf32>
    %c0_17 = arith.constant 0 : index
    %c0_18 = arith.constant 0 : index
    %17 = vector.load %arg8[%c0_17, %c0_18] : memref<1x128xf32, #tpu.memory_space<vmem>>, vector<1x128xf32>
    tpu.vector_store %arg8[%c0_17, %c0_18], %16 {strides = array<i32>} : memref<1x128xf32, #tpu.memory_space<vmem>>, vector<1x128xf32>,
    return
  }
  func.func @transform_0(%arg0: i32) -> (i32, i32) {
    %c0_i32 = arith.constant 0 : i32
    %c0_i32_0 = arith.constant 0 : i32
    return %arg0, %c0_i32 : i32, i32
  }
  func.func @transform_1(%arg0: i32) -> (i32, i32) {
    %c0_i32 = arith.constant 0 : i32
    %c0_i32_0 = arith.constant 0 : i32
    %c0_i32_1 = arith.constant 0 : i32
    return %c0_i32, %c0_i32_0 : i32, i32
  }
  func.func @transform_2(%arg0: i32) -> (i32, i32) {
    %c0_i32 = arith.constant 0 : i32
    %c0_i32_0 = arith.constant 0 : i32
    %c0_i32_1 = arith.constant 0 : i32
    return %c0_i32, %c0_i32_0 : i32, i32
  }
  func.func @transform_3(%arg0: i32) -> (i32, i32) {
    %c0_i32 = arith.constant 0 : i32
    %c0_i32_0 = arith.constant 0 : i32
    %c0_i32_1 = arith.constant 0 : i32
    return %c0_i32, %c0_i32_0 : i32, i32
  }
  func.func @transform_4(%arg0: i32) -> (i32, i32) {
    %c0_i32 = arith.constant 0 : i32
    %c0_i32_0 = arith.constant 0 : i32
    %c0_i32_1 = arith.constant 0 : i32
    return %c0_i32, %c0_i32_0 : i32, i32
  }
  func.func @transform_5(%arg0: i32) -> (i32, i32) {
    %c0_i32 = arith.constant 0 : i32
    %c0_i32_0 = arith.constant 0 : i32
    %c0_i32_1 = arith.constant 0 : i32
    return %c0_i32, %c0_i32_0 : i32, i32
  }
  func.func @transform_6(%arg0: i32) -> (i32, i32) {
    %c0_i32 = arith.constant 0 : i32
    %c0_i32_0 = arith.constant 0 : i32
    %c0_i32_1 = arith.constant 0 : i32
    return %c0_i32, %c0_i32_0 : i32, i32
  }
  func.func @transform_7(%arg0: i32) -> (i32, i32) {
    %c0_i32 = arith.constant 0 : i32
    %c0_i32_0 = arith.constant 0 : i32
    return %arg0, %c0_i32 : i32, i32
  }
}

</mosaic_0001>

<bundles_post_ra>
// kernel: custom-call
= control target key start
LH: loop header
LB: loop body
LE: loop exit
PB: predicated region body
PF: predicated region fallthrough
CT: control target
= control target key end

     0   :  { %2 = vsyncpa [#allocation0], 0  ;;  %s61_s0 = inlined_call_operand.hbm [shape: c64[2,8,8], index: 0, kind: input, shape index: {}]   ;;  %s62_s1 = inlined_call_operand.vmem [shape: f32[2,8,8], index: 1, kind: output, shape index: {}]  }
   0x1   :  { %s3_s8 = sshll.u32 %s62_s1, 4  ;;  %s9_s11 = scalar_lea.hbm %s61_s0, 256  ;;  %s4_s8 = int_to_ptr.vmem [resolvable:$true] %s3_s8 }
   0x2   :  { %p10_p0 = scmp.ne.s32.totalorder %s61_s0, %s9_s11  ;;  %s11_s16 = scalar_lea.hbm %s61_s0, 512 }
   0x3   :  { %p12_p1 = scmp.lt.u32.totalorder %s11_s16, %s9_s11  ;;  %p13_p2 = scmp.lt.u32.totalorder %s9_s11, %s61_s0 }
   0x5   :  { %p14_p3 = por %p13_p2, %p12_p1 }
   0x7   :  { %p15_p4 = pnand %p14_p3, %p10_p0 }
   0x9   :  { %18 = shalt.err (!%p15_p4)  }
   0xa   :  { %s19_s1 = scalar_lea.vmem %s4_s8, 256  ;;  %p24_p6 = scmp.lt.s32.totalorder %s4_s8, %s4_s8 }
   0xb   :  { %p20_p5 = scmp.ne.s32.totalorder %s4_s8, %s19_s1  ;;  %p25_p7 = scmp.lt.s32.totalorder %s19_s1, %s19_s1 }
   0xd   :  { %p26_p8 = por %p25_p7, %p24_p6 }
   0xf   :  { %p27_p9 = pnand %p26_p8, %p20_p5 }
  0x11   :  { %30 = shalt.err (!%p27_p9)  }
  0x12   :  { %6 = dma.hbm_to_vmem [thread:$0]  %s61_s0, 256, %s4_s8, [#allocation0] }
  0x13   :  { %31 = dma.done.wait [#allocation0], 256  }
  0x14   :  { %32 = vsyncadd [#allocation0], 4294967040 }
  0x15   :  { %8 = vsyncpa [#allocation0], 1 }

// kernel: custom-call.1
= control target key start
LH: loop header
LB: loop body
LE: loop exit
PB: predicated region body
PF: predicated region fallthrough
CT: control target
= control target key end

     0   :  { %s59_s0 = inlined_call_operand.hbm [shape: c64[2,8,8], index: 0, kind: input, shape index: {}]   ;;  %s60_s1 = inlined_call_operand.vmem [shape: f32[2,8,8], index: 1, kind: output, shape index: {}]  }
   0x1   :  { %s2_s8 = scalar_lea.hbm %s59_s0, 256 }
   0x2   :  { %3 = vsyncpa [#allocation0], 0  ;;  %s4_s11 = sshll.u32 %s60_s1, 4  ;;  %s34_s14 = scalar_lea.hbm %s59_s0, 512  ;;  %s5_s11 = int_to_ptr.vmem [resolvable:$true] %s4_s11 }
   0x3   :  { %p11_p0 = scmp.ne.s32.totalorder %s2_s8, %s34_s14  ;;  %p13_p1 = scmp.lt.u32.totalorder %s2_s8, %s59_s0 }
   0x4   :  { %p14_p2 = scmp.lt.u32.totalorder %s34_s14, %s34_s14  ;;  %p16_p4 = scmp.lt.u32.totalorder %s34_s14, %s2_s8 }
   0x6   :  { %p15_p3 = por %p14_p2, %p13_p1 }
   0x8   :  { %p17_p5 = por %p16_p4, %p15_p3 }
   0xa   :  { %p18_p6 = pnand %p17_p5, %p11_p0 }
   0xc   :  { %21 = shalt.err (!%p18_p6)  }
   0xd   :  { %s22_s17 = scalar_lea.vmem %s5_s11, 256  ;;  %p27_p8 = scmp.lt.s32.totalorder %s5_s11, %s5_s11 }
   0xe   :  { %p23_p7 = scmp.ne.s32.totalorder %s5_s11, %s22_s17  ;;  %p28_p9 = scmp.lt.s32.totalorder %s22_s17, %s22_s17 }
  0x10   :  { %p29_p10 = por %p28_p9, %p27_p8 }
  0x12   :  { %p30_p11 = pnand %p29_p10, %p23_p7 }
  0x14   :  { %33 = shalt.err (!%p30_p11)  }
  0x15   :  { %7 = dma.hbm_to_vmem [thread:$0]  %s2_s8, 256, %s5_s11, [#allocation0] }
  0x16   :  { %35 = dma.done.wait [#allocation0], 256  }
  0x17   :  { %36 = vsyncadd [#allocation0], 4294967040 }
  0x18   :  { %9 = vsyncpa [#allocation0], 1 }

// kernel: _lambda_.1
= control target key start
LH: loop header
LB: loop body
LE: loop exit
PB: predicated region body
PF: predicated region fallthrough
CT: control target
= control target key end

     0   :  { %v157_v25 = vlaneseq  ;;  %s3076_s1 = inlined_call_operand.vmem [shape: f32[256,512], index: 1, kind: input, shape index: {}]   ;;  %s3077_s0 = inlined_call_operand.vmem [shape: f32[1,256], index: 0, kind: input, shape index: {}]   ;;  %s3078_s3 = inlined_call_operand.vmem [shape: f32[512,512], index: 3, kind: input, shape index: {}]   ;;  %s3079_s2 = inlined_call_operand.vmem [shape: f32[1,512], index: 2, kind: input, shape index: {}]   ;;  %s3080_s5 = inlined_call_operand.vmem [shape: f32[512,128], index: 5, kind: input, shape index: {}]   ;;  %s3081_s4 = inlined_call_operand.vmem [shape: f32[1,512], index: 4, kind: input, shape index: {}]   ;;  %s3082_s6 = inlined_call_operand.vmem [shape: f32[1,128], index: 6, kind: input, shape index: {}]   ;;  %s3083_s7 = inlined_call_operand.vmem [shape: f32[1,128], index: 7, kind: output, shape index: {}]  }
   0x1   :  { %v28_v0 = vld [vmem:[%s3076_s1 + $0x8] sm:$0xff]  ;;  %v27_v2 = vld [vmem:[%s3076_s1] sm:$0xff]  ;;  %v30_v46 = vld [vmem:[%s3076_s1 + $0x18] sm:$0xff] }
   0x2   :  { %v32_v1 = vld [vmem:[%s3076_s1 + $0x28] sm:$0xff]  ;;  %v31_v4 = vld [vmem:[%s3076_s1 + $0x20] sm:$0xff]  ;;  %v1742_v32 = vshrl.u32 %v157_v25, 7  ;;  %v34_v47 = vld [vmem:[%s3076_s1 + $0x38] sm:$0xff] }
   0x3   :  { %v1180_v3 = vpack.c.bf16 %v32_v1, %v28_v0  ;;  %v36_v5 = vld [vmem:[%s3076_s1 + $0x48] sm:$0xff]  ;;  %v1182_v7 = vpack.c.bf16 %v31_v4, %v27_v2  ;;  %v35_v9 = vld [vmem:[%s3076_s1 + $0x40] sm:$0xff]  ;;  %v1244_v48 = vpack.c.bf16 %v34_v47, %v30_v46  ;;  %v29_v50 = vld [vmem:[%s3076_s1 + $0x10] sm:$0xff] }
   0x4   :  { %v40_v6 = vld [vmem:[%s3076_s1 + $0x68] sm:$0xff]  ;;  %v39_v10 = vld [vmem:[%s3076_s1 + $0x60] sm:$0xff]  ;;  %v1757_v39 = vsub.s32 1, %v1742_v32  ;;  %v33_v51 = vld [vmem:[%s3076_s1 + $0x30] sm:$0xff] }
   0x5   :  { %v1184_v8 = vpack.c.bf16 %v40_v6, %v36_v5  ;;  %v44_v11 = vld [vmem:[%s3076_s1 + $0x88] sm:$0xff]  ;;  %1181 = vmatprep.subr.bf16.mxu0 %v1180_v3  ;;  %v1186_v13 = vpack.c.bf16 %v39_v10, %v35_v9  ;;  %v43_v15 = vld [vmem:[%s3076_s1 + $0x80] sm:$0xff]  ;;  %v1246_v53 = vpack.c.bf16 %v33_v51, %v29_v50  ;;  %v38_v54 = vld [vmem:[%s3076_s1 + $0x58] sm:$0xff]  ;;  %1245 = vmatprep.subr.bf16.mxu1 %v1244_v48 }
   0x6   :  { %v48_v12 = vld [vmem:[%s3076_s1 + $0xa8] sm:$0xff]  ;;  %1183 = vmatpush1.bf16.msra.mxu0 %v1182_v7  ;;  %v47_v16 = vld [vmem:[%s3076_s1 + $0xa0] sm:$0xff]  ;;  %v42_v55 = vld [vmem:[%s3076_s1 + $0x78] sm:$0xff] }
   0x7   :  { %1185 = vmatprep.subr.bf16.mxu0 %v1184_v8  ;;  %v1188_v14 = vpack.c.bf16 %v48_v12, %v44_v11  ;;  %v52_v17 = vld [vmem:[%s3076_s1 + $0xc8] sm:$0xff]  ;;  %v1190_v19 = vpack.c.bf16 %v47_v16, %v43_v15  ;;  %v51_v21 = vld [vmem:[%s3076_s1 + $0xc0] sm:$0xff]  ;;  %v37_v56 = vld [vmem:[%s3076_s1 + $0x50] sm:$0xff]  ;;  %v1248_v58 = vpack.c.bf16 %v42_v55, %v38_v54  ;;  %1247 = vmatpush1.bf16.msra.mxu1 %v1246_v53 }
   0x8   :  { %v56_v18 = vld [vmem:[%s3076_s1 + $0xe8] sm:$0xff]  ;;  %v55_v22 = vld [vmem:[%s3076_s1 + $0xe0] sm:$0xff]  ;;  %v41_v59 = vld [vmem:[%s3076_s1 + $0x70] sm:$0xff] }
   0x9   :  { %v1192_v20 = vpack.c.bf16 %v56_v18, %v52_v17  ;;  %v60_v23 = vld [vmem:[%s3076_s1 + $0x108] sm:$0xff]  ;;  %v1194_v26 = vpack.c.bf16 %v55_v22, %v51_v21  ;;  %v59_v28 = vld [vmem:[%s3076_s1 + $0x100] sm:$0xff]  ;;  %v46_v60 = vld [vmem:[%s3076_s1 + $0x98] sm:$0xff]  ;;  %v1250_v3 = vpack.c.bf16 %v41_v59, %v37_v56  ;;  %1249 = vmatprep.subr.bf16.mxu1 %v1248_v58 }
   0xa   :  { %1187 = vmatpush1.bf16.msra.mxu0 %v1186_v13  ;;  %v64_v24 = vld [vmem:[%s3076_s1 + $0x128] sm:$0xff]  ;;  %v63_v29 = vld [vmem:[%s3076_s1 + $0x120] sm:$0xff]  ;;  %v50_v61 = vld [vmem:[%s3076_s1 + $0xb8] sm:$0xff] }
   0xb   :  { %1189 = vmatprep.subr.bf16.mxu0 %v1188_v14  ;;  %v1196_v27 = vpack.c.bf16 %v64_v24, %v60_v23  ;;  %v68_v30 = vld [vmem:[%s3076_s1 + $0x148] sm:$0xff]  ;;  %v1198_v33 = vpack.c.bf16 %v63_v29, %v59_v28  ;;  %v67_v35 = vld [vmem:[%s3076_s1 + $0x140] sm:$0xff]  ;;  %v1252_v4 = vpack.c.bf16 %v50_v61, %v46_v60  ;;  %v45_v5 = vld [vmem:[%s3076_s1 + $0x90] sm:$0xff]  ;;  %1251 = vmatpush1.bf16.msra.mxu1 %v1250_v3 }
   0xc   :  { %v72_v31 = vld [vmem:[%s3076_s1 + $0x168] sm:$0xff]  ;;  %v71_v36 = vld [vmem:[%s3076_s1 + $0x160] sm:$0xff]  ;;  %v49_v6 = vld [vmem:[%s3076_s1 + $0xb0] sm:$0xff] }
   0xd   :  { %v1200_v34 = vpack.c.bf16 %v72_v31, %v68_v30  ;;  %v76_v37 = vld [vmem:[%s3076_s1 + $0x188] sm:$0xff]  ;;  %v1202_v40 = vpack.c.bf16 %v71_v36, %v67_v35  ;;  %v75_v41 = vld [vmem:[%s3076_s1 + $0x180] sm:$0xff]  ;;  %v54_v8 = vld [vmem:[%s3076_s1 + $0xd8] sm:$0xff]  ;;  %v1254_v15 = vpack.c.bf16 %v49_v6, %v45_v5  ;;  %1253 = vmatprep.subr.bf16.mxu1 %v1252_v4 }
   0xe   :  { %1191 = vmatpush1.bf16.msra.mxu0 %v1190_v19  ;;  %v80_v38 = vld [vmem:[%s3076_s1 + $0x1a8] sm:$0xff]  ;;  %v79_v42 = vld [vmem:[%s3076_s1 + $0x1a0] sm:$0xff]  ;;  %v58_v9 = vld [vmem:[%s3076_s1 + $0xf8] sm:$0xff] }
   0xf   :  { %1193 = vmatprep.subr.bf16.mxu0 %v1192_v20  ;;  %v84_v43 = vld [vmem:[%s3076_s1 + $0x1c8] sm:$0xff]  ;;  %v1204_v44 = vpack.c.bf16 %v80_v38, %v76_v37  ;;  %v1780_v49 = vld [vmem:[%s3077_s0] sm:$0x3]  ;;  %v1206_v57 = vpack.c.bf16 %v79_v42, %v75_v41  ;;  %v1256_v16 = vpack.c.bf16 %v58_v9, %v54_v8  ;;  %v53_v17 = vld [vmem:[%s3076_s1 + $0xd0] sm:$0xff]  ;;  %1255 = vmatpush1.bf16.msra.mxu1 %v1254_v15 }
  0x10   :  { %v88_v45 = vld [vmem:[%s3076_s1 + $0x1e8] sm:$0xff]  ;;  %v164_v52 = vrot.slane %v1780_v49, %v1757_v39  ;;  %v83_v63 = vld [vmem:[%s3076_s1 + $0x1c0] sm:$0xff]  ;;  %v57_v18 = vld [vmem:[%s3076_s1 + $0xf0] sm:$0xff] }
  0x11   :  { %v1208_v62 = vpack.c.bf16 %v88_v45, %v84_v43  ;;  %v87_v0 = vld [vmem:[%s3076_s1 + $0x1e0] sm:$0xff]  ;;  %v92_v1 = vld [vmem:[%s3076_s1 + $0x208] sm:$0xff]  ;;  %v62_v20 = vld [vmem:[%s3076_s1 + $0x118] sm:$0xff]  ;;  %1257 = vmatprep.subr.bf16.mxu1 %v1256_v16 }
  0x12   :  { %1195 = vmatpush1.bf16.msra.mxu0 %v1194_v26  ;;  %252 = vmatprep.mubr.f32.mxu0 %v164_v52  ;;  %v96_v2 = vld [vmem:[%s3076_s1 + $0x228] sm:$0xff]  ;;  %v1210_v7 = vpack.c.bf16 %v87_v0, %v83_v63  ;;  %v91_v11 = vld [vmem:[%s3076_s1 + $0x200] sm:$0xff]  ;;  %v66_v21 = vld [vmem:[%s3076_s1 + $0x138] sm:$0xff] }
  0x13   :  { %1197 = vmatprep.subr.bf16.mxu0 %v1196_v27  ;;  %323 = vmatprep.mubr.f32.mxu1 %v164_v52  ;;  %v1212_v10 = vpack.c.bf16 %v96_v2, %v92_v1  ;;  %v95_v12 = vld [vmem:[%s3076_s1 + $0x220] sm:$0xff]  ;;  %v100_v13 = vld [vmem:[%s3076_s1 + $0x248] sm:$0xff]  ;;  %v1258_v27 = vpack.c.bf16 %v57_v18, %v53_v17  ;;  %v1260_v28 = vpack.c.bf16 %v66_v21, %v62_v20  ;;  %v61_v29 = vld [vmem:[%s3076_s1 + $0x110] sm:$0xff] }
  0x14   :  { %v104_v14 = vld [vmem:[%s3076_s1 + $0x268] sm:$0xff]  ;;  %v1214_v19 = vpack.c.bf16 %v95_v12, %v91_v11  ;;  %v99_v23 = vld [vmem:[%s3076_s1 + $0x240] sm:$0xff]  ;;  %v65_v30 = vld [vmem:[%s3076_s1 + $0x130] sm:$0xff] }
  0x15   :  { %v1216_v22 = vpack.c.bf16 %v104_v14, %v100_v13  ;;  %v103_v24 = vld [vmem:[%s3076_s1 + $0x260] sm:$0xff]  ;;  %v108_v25 = vld [vmem:[%s3076_s1 + $0x288] sm:$0xff]  ;;  %1259 = vmatpush1.bf16.msra.mxu1 %v1258_v27  ;;  %v1262_v41 = vpack.c.bf16 %v65_v30, %v61_v29  ;;  %v69_v43 = vld [vmem:[%s3076_s1 + $0x150] sm:$0xff] }
  0x16   :  { %1199 = vmatpush1.bf16.msra.mxu0 %v1198_v33  ;;  %v112_v26 = vld [vmem:[%s3076_s1 + $0x2a8] sm:$0xff]  ;;  %v1218_v31 = vpack.c.bf16 %v103_v24, %v99_v23  ;;  %v70_v33 = vld [vmem:[%s3076_s1 + $0x158] sm:$0xff]  ;;  %v107_v36 = vld [vmem:[%s3076_s1 + $0x280] sm:$0xff]  ;;  %1261 = vmatprep.subr.bf16.mxu1 %v1260_v28 }
  0x17   :  { %1201 = vmatprep.subr.bf16.mxu0 %v1200_v34  ;;  %v74_v34 = vld [vmem:[%s3076_s1 + $0x178] sm:$0xff]  ;;  %v1220_v35 = vpack.c.bf16 %v112_v26, %v108_v25  ;;  %v111_v37 = vld [vmem:[%s3076_s1 + $0x2a0] sm:$0xff]  ;;  %v116_v38 = vld [vmem:[%s3076_s1 + $0x2c8] sm:$0xff] }
  0x18   :  { %v1264_v42 = vpack.c.bf16 %v74_v34, %v70_v33  ;;  %v1222_v45 = vpack.c.bf16 %v111_v37, %v107_v36  ;;  %v78_v46 = vld [vmem:[%s3076_s1 + $0x198] sm:$0xff]  ;;  %v115_v50 = vld [vmem:[%s3076_s1 + $0x2c0] sm:$0xff]  ;;  %v124_v52 = vld [vmem:[%s3076_s1 + $0x308] sm:$0xff] }
  0x19   :  { %v82_v47 = vld [vmem:[%s3076_s1 + $0x1b8] sm:$0xff]  ;;  %v119_v51 = vld [vmem:[%s3076_s1 + $0x2e0] sm:$0xff]  ;;  %v128_v53 = vld [vmem:[%s3076_s1 + $0x328] sm:$0xff]  ;;  %1263 = vmatpush1.bf16.msra.mxu1 %v1262_v41  ;;  %v2013_v41 = vsub.s32 0, %v1742_v32 }
  0x1a   :  { %1203 = vmatpush1.bf16.msra.mxu0 %v1202_v40  ;;  %v120_v40 = vld [vmem:[%s3076_s1 + $0x2e8] sm:$0xff]  ;;  %1265 = vmatprep.subr.bf16.mxu1 %v1264_v42  ;;  %v1268_v55 = vpack.c.bf16 %v82_v47, %v78_v46  ;;  %v77_v56 = vld [vmem:[%s3076_s1 + $0x190] sm:$0xff]  ;;  %v1226_v58 = vpack.c.bf16 %v119_v51, %v115_v50  ;;  %v86_v59 = vld [vmem:[%s3076_s1 + $0x1d8] sm:$0xff]  ;;  %v1228_v61 = vpack.c.bf16 %v128_v53, %v124_v52 }
  0x1b   :  { %1205 = vmatprep.subr.bf16.mxu0 %v1204_v44  ;;  %v73_v44 = vld [vmem:[%s3076_s1 + $0x170] sm:$0xff]  ;;  %v1224_v48 = vpack.c.bf16 %v120_v40, %v116_v38  ;;  %v90_v60 = vld [vmem:[%s3076_s1 + $0x1f8] sm:$0xff]  ;;  %v127_v63 = vld [vmem:[%s3076_s1 + $0x320] sm:$0xff] }
  0x1c   :  { %v1266_v54 = vpack.c.bf16 %v73_v44, %v69_v43  ;;  %v132_v0 = vld [vmem:[%s3076_s1 + $0x348] sm:$0xff]  ;;  %v1272_v3 = vpack.c.bf16 %v90_v60, %v86_v59  ;;  %v85_v4 = vld [vmem:[%s3076_s1 + $0x1d0] sm:$0xff]  ;;  %v98_v8 = vld [vmem:[%s3076_s1 + $0x238] sm:$0xff] }
  0x1d   :  { %v136_v1 = vld [vmem:[%s3076_s1 + $0x368] sm:$0xff]  ;;  %v89_v5 = vld [vmem:[%s3076_s1 + $0x1f0] sm:$0xff]  ;;  %v135_v11 = vld [vmem:[%s3076_s1 + $0x360] sm:$0xff] }
  0x1e   :  { %1207 = vmatpush1.bf16.msra.mxu0 %v1206_v57  ;;  %v81_v57 = vld [vmem:[%s3076_s1 + $0x1b0] sm:$0xff]  ;;  %1267 = vmatpush1.bf16.msra.mxu1 %v1266_v54  ;;  %v1232_v9 = vpack.c.bf16 %v136_v1, %v132_v0  ;;  %v140_v12 = vld [vmem:[%s3076_s1 + $0x388] sm:$0xff]  ;;  %v1274_v14 = vpack.c.bf16 %v89_v5, %v85_v4  ;;  %v106_v20 = vld [vmem:[%s3076_s1 + $0x278] sm:$0xff] }
  0x1f   :  { %1209 = vmatprep.subr.bf16.mxu0 %v1208_v62  ;;  %v123_v62 = vld [vmem:[%s3076_s1 + $0x300] sm:$0xff]  ;;  %v1270_v2 = vpack.c.bf16 %v81_v57, %v77_v56  ;;  %1269 = vmatprep.subr.bf16.mxu1 %v1268_v55  ;;  %v144_v13 = vld [vmem:[%s3076_s1 + $0x3a8] sm:$0xff]  ;;  %v93_v16 = vld [vmem:[%s3076_s1 + $0x210] sm:$0xff]  ;;  %v2041_v55 = vrot.slane %v1780_v49, %v2013_v41 }
  0x20   :  { %v1230_v6 = vpack.c.bf16 %v127_v63, %v123_v62  ;;  %v97_v17 = vld [vmem:[%s3076_s1 + $0x230] sm:$0xff]  ;;  %v1236_v21 = vpack.c.bf16 %v144_v13, %v140_v12  ;;  %v143_v23 = vld [vmem:[%s3076_s1 + $0x3a0] sm:$0xff]  ;;  %v148_v24 = vld [vmem:[%s3076_s1 + $0x3c8] sm:$0xff] }
  0x21   :  { %v152_v25 = vld [vmem:[%s3076_s1 + $0x3e8] sm:$0xff]  ;;  %v1278_v26 = vpack.c.bf16 %v97_v17, %v93_v16  ;;  %v101_v28 = vld [vmem:[%s3076_s1 + $0x250] sm:$0xff]  ;;  %v114_v33 = vld [vmem:[%s3076_s1 + $0x2b8] sm:$0xff] }
  0x22   :  { %1211 = vmatpush1.bf16.msra.mxu0 %v1210_v7  ;;  %v94_v7 = vld [vmem:[%s3076_s1 + $0x218] sm:$0xff]  ;;  %1271 = vmatpush1.bf16.msra.mxu1 %v1270_v2  ;;  %v105_v29 = vld [vmem:[%s3076_s1 + $0x270] sm:$0xff]  ;;  %v1240_v34 = vpack.c.bf16 %v152_v25, %v148_v24  ;;  %v151_v36 = vld [vmem:[%s3076_s1 + $0x3e0] sm:$0xff] }
  0x23   :  { %1213 = vmatprep.subr.bf16.mxu0 %v1212_v10  ;;  %v131_v10 = vld [vmem:[%s3076_s1 + $0x340] sm:$0xff]  ;;  %1273 = vmatprep.subr.bf16.mxu1 %v1272_v3  ;;  %v1276_v15 = vpack.c.bf16 %v98_v8, %v94_v7  ;;  %v1282_v37 = vpack.c.bf16 %v105_v29, %v101_v28  ;;  %v335_v38 = vld [vmem:[%s3078_s3 + $0x8] sm:$0xff]  ;;  %v109_v43 = vld [vmem:[%s3076_s1 + $0x290] sm:$0xff] }
  0x24   :  { %v1234_v18 = vpack.c.bf16 %v135_v11, %v131_v10  ;;  %v339_v40 = vld [vmem:[%s3078_s3 + $0x28] sm:$0xff]  ;;  %v113_v44 = vld [vmem:[%s3076_s1 + $0x2b0] sm:$0xff]  ;;  %v118_v46 = vld [vmem:[%s3076_s1 + $0x2d8] sm:$0xff] }
  0x25   :  { %v122_v47 = vld [vmem:[%s3076_s1 + $0x2f8] sm:$0xff]  ;;  %v334_v50 = vld [vmem:[%s3078_s3] sm:$0xff]  ;;  %v1286_v52 = vpack.c.bf16 %v113_v44, %v109_v43  ;;  %v343_v53 = vld [vmem:[%s3078_s3 + $0x48] sm:$0xff] }
  0x26   :  { %1215 = vmatpush1.bf16.msra.mxu0 %v1214_v19  ;;  %v102_v19 = vld [vmem:[%s3076_s1 + $0x258] sm:$0xff]  ;;  %1275 = vmatpush1.bf16.msra.mxu1 %v1274_v14  ;;  %v338_v51 = vld [vmem:[%s3078_s3 + $0x20] sm:$0xff]  ;;  %v347_v54 = vld [vmem:[%s3078_s3 + $0x68] sm:$0xff]  ;;  %v1288_v56 = vpack.c.bf16 %v122_v47, %v118_v46 }
  0x27   :  { %1217 = vmatprep.subr.bf16.mxu0 %v1216_v22  ;;  %v139_v22 = vld [vmem:[%s3076_s1 + $0x380] sm:$0xff]  ;;  %1277 = vmatprep.subr.bf16.mxu1 %v1276_v15  ;;  %v1280_v27 = vpack.c.bf16 %v106_v20, %v102_v19  ;;  %v117_v57 = vld [vmem:[%s3076_s1 + $0x2d0] sm:$0xff]  ;;  %v126_v59 = vld [vmem:[%s3076_s1 + $0x318] sm:$0xff]  ;;  %v1310_v60 = vpack.c.bf16 %v338_v51, %v334_v50 }
  0x28   :  { %v1238_v30 = vpack.c.bf16 %v143_v23, %v139_v22  ;;  %v130_v49 = vld [vmem:[%s3076_s1 + $0x338] sm:$0xff]  ;;  %v342_v62 = vld [vmem:[%s3078_s3 + $0x40] sm:$0xff]  ;;  %v351_v1 = vld [vmem:[%s3078_s3 + $0x88] sm:$0xff] }
  0x29   :  { %v346_v63 = vld [vmem:[%s3078_s3 + $0x60] sm:$0xff]  ;;  %v355_v2 = vld [vmem:[%s3078_s3 + $0xa8] sm:$0xff]  ;;  %v1292_v3 = vpack.c.bf16 %v130_v49, %v126_v59  ;;  %v125_v4 = vld [vmem:[%s3076_s1 + $0x310] sm:$0xff] }
  0x2a   :  { %1219 = vmatpush1.bf16.msra.mxu0 %v1218_v31  ;;  %v110_v31 = vld [vmem:[%s3076_s1 + $0x298] sm:$0xff]  ;;  %1279 = vmatpush1.bf16.msra.mxu1 %v1278_v26  ;;  %v129_v5 = vld [vmem:[%s3076_s1 + $0x330] sm:$0xff]  ;;  %v1314_v8 = vpack.c.bf16 %v346_v63, %v342_v62  ;;  %v350_v10 = vld [vmem:[%s3078_s3 + $0x80] sm:$0xff] }
  0x2b   :  { %1221 = vmatprep.subr.bf16.mxu0 %v1220_v35  ;;  %v147_v35 = vld [vmem:[%s3076_s1 + $0x3c0] sm:$0xff]  ;;  %1281 = vmatprep.subr.bf16.mxu1 %v1280_v27  ;;  %v1284_v42 = vpack.c.bf16 %v114_v33, %v110_v31  ;;  %v138_v7 = vld [vmem:[%s3076_s1 + $0x378] sm:$0xff]  ;;  %v1294_v12 = vpack.c.bf16 %v129_v5, %v125_v4  ;;  %v359_v13 = vld [vmem:[%s3078_s3 + $0xc8] sm:$0xff] }
  0x2c   :  { %v354_v11 = vld [vmem:[%s3078_s3 + $0xa0] sm:$0xff]  ;;  %v363_v14 = vld [vmem:[%s3078_s3 + $0xe8] sm:$0xff]  ;;  %v133_v16 = vld [vmem:[%s3076_s1 + $0x350] sm:$0xff] }
  0x2d   :  { %v137_v17 = vld [vmem:[%s3076_s1 + $0x370] sm:$0xff]  ;;  %v146_v19 = vld [vmem:[%s3076_s1 + $0x3b8] sm:$0xff]  ;;  %v1318_v20 = vpack.c.bf16 %v354_v11, %v350_v10  ;;  %v358_v22 = vld [vmem:[%s3078_s3 + $0xc0] sm:$0xff] }
  0x2e   :  { %1223 = vmatpush1.bf16.msra.mxu0 %v1222_v45  ;;  %v1242_v45 = vpack.c.bf16 %v151_v36, %v147_v35  ;;  %1283 = vmatpush1.bf16.msra.mxu1 %v1282_v37  ;;  %v362_v23 = vld [vmem:[%s3078_s3 + $0xe0] sm:$0xff]  ;;  %v1298_v24 = vpack.c.bf16 %v137_v17, %v133_v16  ;;  %v367_v25 = vld [vmem:[%s3078_s3 + $0x108] sm:$0xff]  ;;  %v141_v28 = vld [vmem:[%s3076_s1 + $0x390] sm:$0xff] }
  0x2f   :  { %1225 = vmatprep.subr.bf16.mxu0 %v1224_v48  ;;  %v1308_v48 = vpack.c.bf16 %v339_v40, %v335_v38  ;;  %1285 = vmatprep.subr.bf16.mxu1 %v1284_v42  ;;  %v371_v26 = vld [vmem:[%s3078_s3 + $0x128] sm:$0xff]  ;;  %v145_v29 = vld [vmem:[%s3076_s1 + $0x3b0] sm:$0xff]  ;;  %v154_v31 = vld [vmem:[%s3076_s1 + $0x3f8] sm:$0xff]  ;;  %v1322_v33 = vpack.c.bf16 %v362_v23, %v358_v22 }
  0x30   :  { %v366_v35 = vld [vmem:[%s3078_s3 + $0x100] sm:$0xff]  ;;  %v1302_v37 = vpack.c.bf16 %v145_v29, %v141_v28  ;;  %v375_v38 = vld [vmem:[%s3078_s3 + $0x148] sm:$0xff]  ;;  %v149_v43 = vld [vmem:[%s3076_s1 + $0x3d0] sm:$0xff] }
  0x31   :  { %v370_v36 = vld [vmem:[%s3078_s3 + $0x120] sm:$0xff]  ;;  %v379_v40 = vld [vmem:[%s3078_s3 + $0x168] sm:$0xff]  ;;  %v153_v44 = vld [vmem:[%s3076_s1 + $0x3f0] sm:$0xff] }
  0x32   :  { %1227 = vmatpush1.bf16.msra.mxu0 %v1226_v58  ;;  %v121_v58 = vld [vmem:[%s3076_s1 + $0x2f0] sm:$0xff]  ;;  %1287 = vmatpush1.bf16.msra.mxu1 %v1286_v52  ;;  %v341_v46 = vld [vmem:[%s3078_s3 + $0x38] sm:$0xff]  ;;  %v1326_v47 = vpack.c.bf16 %v370_v36, %v366_v35  ;;  %v374_v50 = vld [vmem:[%s3078_s3 + $0x140] sm:$0xff]  ;;  %v1306_v52 = vpack.c.bf16 %v153_v44, %v149_v43 }
  0x33   :  { %1229 = vmatprep.subr.bf16.mxu0 %v1228_v61  ;;  %v1312_v61 = vpack.c.bf16 %v347_v54, %v343_v53  ;;  %v1290_v0 = vpack.c.bf16 %v121_v58, %v117_v57  ;;  %1289 = vmatprep.subr.bf16.mxu1 %v1288_v56  ;;  %v378_v51 = vld [vmem:[%s3078_s3 + $0x160] sm:$0xff]  ;;  %v383_v53 = vld [vmem:[%s3078_s3 + $0x188] sm:$0xff]  ;;  %v336_v57 = vld [vmem:[%s3078_s3 + $0x10] sm:$0xff] }
  0x34   :  { %v387_v54 = vld [vmem:[%s3078_s3 + $0x1a8] sm:$0xff]  ;;  %v340_v58 = vld [vmem:[%s3078_s3 + $0x30] sm:$0xff]  ;;  %v345_v59 = vld [vmem:[%s3078_s3 + $0x58] sm:$0xff] }
  0x35   :  { %v349_v49 = vld [vmem:[%s3078_s3 + $0x78] sm:$0xff]  ;;  %v382_v62 = vld [vmem:[%s3078_s3 + $0x180] sm:$0xff]  ;;  %v344_v4 = vld [vmem:[%s3078_s3 + $0x50] sm:$0xff] }
  0x36   :  { %1231 = vmatpush1.bf16.msra.mxu0 %v1230_v6  ;;  %v134_v6 = vld [vmem:[%s3076_s1 + $0x358] sm:$0xff]  ;;  %1291 = vmatpush1.bf16.msra.mxu1 %v1290_v0  ;;  %v386_v63 = vld [vmem:[%s3078_s3 + $0x1a0] sm:$0xff]  ;;  %v1438_v0 = vpack.c.bf16 %v340_v58, %v336_v57  ;;  %v348_v5 = vld [vmem:[%s3078_s3 + $0x70] sm:$0xff] }
  0x37   :  { %1233 = vmatprep.subr.bf16.mxu0 %v1232_v9  ;;  %v1316_v9 = vpack.c.bf16 %v355_v2, %v351_v1  ;;  %1293 = vmatprep.subr.bf16.mxu1 %v1292_v3  ;;  %v1296_v15 = vpack.c.bf16 %v138_v7, %v134_v6  ;;  %v391_v1 = vld [vmem:[%s3078_s3 + $0x1c8] sm:$0xff]  ;;  %v1440_v3 = vpack.c.bf16 %v349_v49, %v345_v59  ;;  %v353_v6 = vld [vmem:[%s3078_s3 + $0x98] sm:$0xff]  ;;  %v390_v10 = vld [vmem:[%s3078_s3 + $0x1c0] sm:$0xff] }
  0x38   :  { %v395_v2 = vld [vmem:[%s3078_s3 + $0x1e8] sm:$0xff]  ;;  %v357_v7 = vld [vmem:[%s3078_s3 + $0xb8] sm:$0xff]  ;;  %v394_v11 = vld [vmem:[%s3078_s3 + $0x1e0] sm:$0xff] }
  0x39   :  { %v356_v16 = vld [vmem:[%s3078_s3 + $0xb0] sm:$0xff]  ;;  %v361_v17 = vld [vmem:[%s3078_s3 + $0xd8] sm:$0xff]  ;;  %v402_v22 = vld [vmem:[%s3078_s3 + $0x220] sm:$0xff] }
  0x3a   :  { %1235 = vmatpush1.bf16.msra.mxu0 %v1234_v18  ;;  %v142_v18 = vld [vmem:[%s3076_s1 + $0x398] sm:$0xff]  ;;  %1295 = vmatpush1.bf16.msra.mxu1 %v1294_v12  ;;  %v1442_v12 = vpack.c.bf16 %v348_v5, %v344_v4  ;;  %v364_v28 = vld [vmem:[%s3078_s3 + $0xf0] sm:$0xff]  ;;  %v410_v35 = vld [vmem:[%s3078_s3 + $0x260] sm:$0xff] }
  0x3b   :  { %1237 = vmatprep.subr.bf16.mxu0 %v1236_v21  ;;  %v1320_v21 = vpack.c.bf16 %v363_v14, %v359_v13  ;;  %1297 = vmatprep.subr.bf16.mxu1 %v1296_v15  ;;  %v1300_v27 = vpack.c.bf16 %v146_v19, %v142_v18  ;;  %v399_v13 = vld [vmem:[%s3078_s3 + $0x208] sm:$0xff]  ;;  %v1444_v14 = vpack.c.bf16 %v357_v7, %v353_v6  ;;  %v352_v15 = vld [vmem:[%s3078_s3 + $0x90] sm:$0xff]  ;;  %v365_v18 = vld [vmem:[%s3078_s3 + $0xf8] sm:$0xff] }
  0x3c   :  { %v1338_v19 = vpack.c.bf16 %v394_v11, %v390_v10  ;;  %v1446_v23 = vpack.c.bf16 %v356_v16, %v352_v15  ;;  %v369_v29 = vld [vmem:[%s3078_s3 + $0x118] sm:$0xff]  ;;  %v372_v43 = vld [vmem:[%s3078_s3 + $0x130] sm:$0xff]  ;;  %v434_v10 = vld [vmem:[%s3078_s3 + $0x320] sm:$0xff] }
  0x3d   :  { %v377_v44 = vld [vmem:[%s3078_s3 + $0x158] sm:$0xff]  ;;  %v380_v57 = vld [vmem:[%s3078_s3 + $0x170] sm:$0xff] }
  0x3e   :  { %1239 = vmatpush1.bf16.msra.mxu0 %v1238_v30  ;;  %v150_v30 = vld [vmem:[%s3076_s1 + $0x3d8] sm:$0xff]  ;;  %1299 = vmatpush1.bf16.msra.mxu1 %v1298_v24  ;;  %v407_v24 = vld [vmem:[%s3078_s3 + $0x248] sm:$0xff]  ;;  %v388_v4 = vld [vmem:[%s3078_s3 + $0x1b0] sm:$0xff] }
  0x3f   :  { %1241 = vmatprep.subr.bf16.mxu0 %v1240_v34  ;;  %v1324_v34 = vpack.c.bf16 %v371_v26, %v367_v25  ;;  %1301 = vmatprep.subr.bf16.mxu1 %v1300_v27  ;;  %v1304_v42 = vpack.c.bf16 %v154_v31, %v150_v30  ;;  %v411_v25 = vld [vmem:[%s3078_s3 + $0x268] sm:$0xff]  ;;  %v1448_v26 = vpack.c.bf16 %v365_v18, %v361_v17  ;;  %v360_v27 = vld [vmem:[%s3078_s3 + $0xd0] sm:$0xff]  ;;  %v373_v30 = vld [vmem:[%s3078_s3 + $0x138] sm:$0xff] }
  0x40   :  { %v1450_v36 = vpack.c.bf16 %v364_v28, %v360_v27  ;;  %v385_v58 = vld [vmem:[%s3078_s3 + $0x198] sm:$0xff]  ;;  %v396_v15 = vld [vmem:[%s3078_s3 + $0x1f0] sm:$0xff] }
  0x41   :  { %v389_v59 = vld [vmem:[%s3078_s3 + $0x1b8] sm:$0xff]  ;;  %v404_v27 = vld [vmem:[%s3078_s3 + $0x230] sm:$0xff] }
  0x42   :  { %1243 = vmatpush1.bf16.msra.mxu0 %v1242_v45  ;;  %v337_v45 = vld [vmem:[%s3078_s3 + $0x18] sm:$0xff]  ;;  %1303 = vmatpush1.bf16.msra.mxu1 %v1302_v37  ;;  %v415_v37 = vld [vmem:[%s3078_s3 + $0x288] sm:$0xff] }
  0x43   :  { %1309 = vmatprep.subr.bf16.mxu0 %v1308_v48  ;;  %v1328_v48 = vpack.c.bf16 %v379_v40, %v375_v38  ;;  %1305 = vmatprep.subr.bf16.mxu1 %v1304_v42  ;;  %v1436_v56 = vpack.c.bf16 %v341_v46, %v337_v45  ;;  %v419_v38 = vld [vmem:[%s3078_s3 + $0x2a8] sm:$0xff]  ;;  %v1452_v40 = vpack.c.bf16 %v373_v30, %v369_v29  ;;  %v368_v42 = vld [vmem:[%s3078_s3 + $0x110] sm:$0xff]  ;;  %v381_v45 = vld [vmem:[%s3078_s3 + $0x178] sm:$0xff] }
  0x44   :  { %v393_v5 = vld [vmem:[%s3078_s3 + $0x1d8] sm:$0xff] }
  0x45   :  { %253 = vmatmul.mubr.f32.vlgmr.msra.gmra.mrb[0].mxu0 %v2041_v55  ;;  %v397_v6 = vld [vmem:[%s3078_s3 + $0x1f8] sm:$0xff] }
  0x46   :  { %1311 = vmatpush1.bf16.msra.mxu0 %v1310_v60  ;;  %v1330_v60 = vpack.c.bf16 %v378_v51, %v374_v50  ;;  %1307 = vmatpush1.bf16.msra.mxu1 %v1306_v52  ;;  %v418_v50 = vld [vmem:[%s3078_s3 + $0x2a0] sm:$0xff]  ;;  %v1454_v51 = vpack.c.bf16 %v372_v43, %v368_v42  ;;  %v423_v52 = vld [vmem:[%s3078_s3 + $0x2c8] sm:$0xff]  ;;  %v401_v16 = vld [vmem:[%s3078_s3 + $0x218] sm:$0xff] }
  0x47   :  { %1313 = vmatprep.subr.bf16.mxu0 %v1312_v61  ;;  %v1332_v61 = vpack.c.bf16 %v387_v54, %v383_v53  ;;  %1437 = vmatprep.subr.bf16.mxu1 %v1436_v56  ;;  %v427_v53 = vld [vmem:[%s3078_s3 + $0x2e8] sm:$0xff]  ;;  %v1456_v54 = vpack.c.bf16 %v381_v45, %v377_v44  ;;  %v376_v56 = vld [vmem:[%s3078_s3 + $0x150] sm:$0xff]  ;;  %v405_v17 = vld [vmem:[%s3078_s3 + $0x238] sm:$0xff] }
  0x48   :  { %v409_v28 = vld [vmem:[%s3078_s3 + $0x258] sm:$0xff] }
  0x49   :  { %324 = vmatmul.mubr.f32.vlgmr.msra.gmra.mrb[0].mxu1 %v2041_v55  ;;  %v403_v55 = vld [vmem:[%s3078_s3 + $0x228] sm:$0xff]  ;;  %v413_v29 = vld [vmem:[%s3078_s3 + $0x278] sm:$0xff] }
  0x4a   :  { %1315 = vmatpush1.bf16.msra.mxu0 %v1314_v8  ;;  %v1334_v8 = vpack.c.bf16 %v386_v63, %v382_v62  ;;  %1439 = vmatpush1.bf16.msra.mxu1 %v1438_v0  ;;  %v426_v62 = vld [vmem:[%s3078_s3 + $0x2e0] sm:$0xff]  ;;  %v1458_v63 = vpack.c.bf16 %v380_v57, %v376_v56  ;;  %v431_v0 = vld [vmem:[%s3078_s3 + $0x308] sm:$0xff]  ;;  %v421_v42 = vld [vmem:[%s3078_s3 + $0x2b8] sm:$0xff] }
  0x4b   :  { %1317 = vmatprep.subr.bf16.mxu0 %v1316_v9  ;;  %v1336_v9 = vpack.c.bf16 %v395_v2, %v391_v1  ;;  %1441 = vmatprep.subr.bf16.mxu1 %v1440_v3  ;;  %v435_v1 = vld [vmem:[%s3078_s3 + $0x328] sm:$0xff]  ;;  %v1460_v2 = vpack.c.bf16 %v389_v59, %v385_v58  ;;  %v384_v3 = vld [vmem:[%s3078_s3 + $0x190] sm:$0xff]  ;;  %v433_v56 = vld [vmem:[%s3078_s3 + $0x318] sm:$0xff] }
  0x4c   :  { %v1462_v11 = vpack.c.bf16 %v388_v4, %v384_v3  ;;  %v437_v57 = vld [vmem:[%s3078_s3 + $0x338] sm:$0xff] }
  0x4d   :  { %v1484_v59 = vpack.c.bf16 %v437_v57, %v433_v56  ;;  %v449_v3 = vld [vmem:[%s3078_s3 + $0x398] sm:$0xff]  ;;  %v476_v56 = vld [vmem:[%s3078_s3 + $0x470] sm:$0xff]  ;;  %v479_v57 = vld [vmem:[%s3078_s3 + $0x488] sm:$0xff] }
  0x4e   :  { %1319 = vmatpush1.bf16.msra.mxu0 %v1318_v20  ;;  %v1340_v20 = vpack.c.bf16 %v403_v55, %v399_v13  ;;  %1443 = vmatpush1.bf16.msra.mxu1 %v1442_v12  ;;  %v439_v12 = vld [vmem:[%s3078_s3 + $0x348] sm:$0xff]  ;;  %v1464_v55 = vpack.c.bf16 %v397_v6, %v393_v5  ;;  %v453_v4 = vld [vmem:[%s3078_s3 + $0x3b8] sm:$0xff] }
  0x4f   :  { %1321 = vmatprep.subr.bf16.mxu0 %v1320_v21  ;;  %v398_v21 = vld [vmem:[%s3078_s3 + $0x200] sm:$0xff]  ;;  %1445 = vmatprep.subr.bf16.mxu1 %v1444_v14  ;;  %v443_v13 = vld [vmem:[%s3078_s3 + $0x368] sm:$0xff]  ;;  %v392_v14 = vld [vmem:[%s3078_s3 + $0x1d0] sm:$0xff]  ;;  %v1492_v6 = vpack.c.bf16 %v453_v4, %v449_v3 }
  0x50   :  { %v1342_v31 = vpack.c.bf16 %v402_v22, %v398_v21  ;;  %v442_v21 = vld [vmem:[%s3078_s3 + $0x360] sm:$0xff]  ;;  %v1466_v22 = vpack.c.bf16 %v396_v15, %v392_v14  ;;  %v484_v3 = vld [vmem:[%s3078_s3 + $0x4b0] sm:$0xff]  ;;  %v487_v4 = vld [vmem:[%s3078_s3 + $0x4c8] sm:$0xff] }
  0x51   :  { %v454_v14 = vld [vmem:[%s3078_s3 + $0x3c0] sm:$0xff] }
  0x52   :  { %1323 = vmatpush1.bf16.msra.mxu0 %v1322_v33  ;;  %v1344_v33 = vpack.c.bf16 %v411_v25, %v407_v24  ;;  %1447 = vmatpush1.bf16.msra.mxu1 %v1446_v23  ;;  %v447_v23 = vld [vmem:[%s3078_s3 + $0x388] sm:$0xff]  ;;  %v1468_v25 = vpack.c.bf16 %v405_v17, %v401_v16  ;;  %v458_v15 = vld [vmem:[%s3078_s3 + $0x3e0] sm:$0xff] }
  0x53   :  { %1325 = vmatprep.subr.bf16.mxu0 %v1324_v34  ;;  %v406_v34 = vld [vmem:[%s3078_s3 + $0x240] sm:$0xff]  ;;  %1449 = vmatprep.subr.bf16.mxu1 %v1448_v26  ;;  %v451_v24 = vld [vmem:[%s3078_s3 + $0x3a8] sm:$0xff]  ;;  %v400_v26 = vld [vmem:[%s3078_s3 + $0x210] sm:$0xff]  ;;  %v1370_v17 = vpack.c.bf16 %v458_v15, %v454_v14 }
  0x54   :  { %v1346_v46 = vpack.c.bf16 %v410_v35, %v406_v34  ;;  %v450_v34 = vld [vmem:[%s3078_s3 + $0x3a0] sm:$0xff]  ;;  %v1470_v35 = vpack.c.bf16 %v404_v27, %v400_v26  ;;  %v492_v14 = vld [vmem:[%s3078_s3 + $0x4f0] sm:$0xff]  ;;  %v495_v15 = vld [vmem:[%s3078_s3 + $0x508] sm:$0xff] }
  0x55   :  { %v2480_v27 = vld [vmem:[%s3079_s2] sm:$0xf] }
  0x56   :  { %1327 = vmatpush1.bf16.msra.mxu0 %v1326_v47  ;;  %v1348_v47 = vpack.c.bf16 %v419_v38, %v415_v37  ;;  %1451 = vmatpush1.bf16.msra.mxu1 %v1450_v36  ;;  %v1472_v36 = vpack.c.bf16 %v413_v29, %v409_v28  ;;  %v408_v37 = vld [vmem:[%s3078_s3 + $0x250] sm:$0xff]  ;;  %v171_v28 = vrot.slane %v2480_v27, %v2013_v41 }
  0x57   :  { %1329 = vmatprep.subr.bf16.mxu0 %v1328_v48  ;;  %v414_v48 = vld [vmem:[%s3078_s3 + $0x280] sm:$0xff]  ;;  %1453 = vmatprep.subr.bf16.mxu1 %v1452_v40  ;;  %v412_v38 = vld [vmem:[%s3078_s3 + $0x270] sm:$0xff]  ;;  %v417_v40 = vld [vmem:[%s3078_s3 + $0x298] sm:$0xff]  ;;  %v175_v29 = vrot.slane %v2480_v27, %v1757_v39 }
  0x58   :  { %v1350_v49 = vpack.c.bf16 %v418_v50, %v414_v48  ;;  %v1474_v44 = vpack.c.bf16 %v412_v38, %v408_v37  ;;  %v1476_v45 = vpack.c.bf16 %v421_v42, %v417_v40  ;;  %v425_v48 = vld [vmem:[%s3078_s3 + $0x2d8] sm:$0xff]  ;;  %v468_v37 = vld [vmem:[%s3078_s3 + $0x430] sm:$0xff]  ;;  %v471_v38 = vld [vmem:[%s3078_s3 + $0x448] sm:$0xff] }
  0x59   :  { %v429_v50 = vld [vmem:[%s3078_s3 + $0x2f8] sm:$0xff]  ;;  %v475_v42 = vld [vmem:[%s3078_s3 + $0x468] sm:$0xff] }
  0x5a   :  { %1331 = vmatpush1.bf16.msra.mxu0 %v1330_v60  ;;  %v1352_v60 = vpack.c.bf16 %v427_v53, %v423_v52  ;;  %1455 = vmatpush1.bf16.msra.mxu1 %v1454_v51  ;;  %v1480_v52 = vpack.c.bf16 %v429_v50, %v425_v48  ;;  %v424_v53 = vld [vmem:[%s3078_s3 + $0x2d0] sm:$0xff]  ;;  %v470_v48 = vld [vmem:[%s3078_s3 + $0x440] sm:$0xff] }
  0x5b   :  { %1333 = vmatprep.subr.bf16.mxu0 %v1332_v61  ;;  %v422_v61 = vld [vmem:[%s3078_s3 + $0x2c0] sm:$0xff]  ;;  %1457 = vmatprep.subr.bf16.mxu1 %v1456_v54  ;;  %v428_v54 = vld [vmem:[%s3078_s3 + $0x2f0] sm:$0xff] }
  0x5c   :  { %v1354_v7 = vpack.c.bf16 %v426_v62, %v422_v61  ;;  %v1482_v58 = vpack.c.bf16 %v428_v54, %v424_v53  ;;  %v441_v61 = vld [vmem:[%s3078_s3 + $0x358] sm:$0xff]  ;;  %v474_v50 = vld [vmem:[%s3078_s3 + $0x460] sm:$0xff]  ;;  %v472_v54 = vld [vmem:[%s3078_s3 + $0x450] sm:$0xff] }
  0x5d   :  { %v445_v62 = vld [vmem:[%s3078_s3 + $0x378] sm:$0xff] }
  0x5e   :  { %1335 = vmatpush1.bf16.msra.mxu0 %v1334_v8  ;;  %v1356_v8 = vpack.c.bf16 %v435_v1, %v431_v0  ;;  %1459 = vmatpush1.bf16.msra.mxu1 %v1458_v63  ;;  %v1488_v0 = vpack.c.bf16 %v445_v62, %v441_v61  ;;  %v440_v1 = vld [vmem:[%s3078_s3 + $0x350] sm:$0xff]  ;;  %v1506_v61 = vpack.c.bf16 %v476_v56, %v472_v54  ;;  %v478_v62 = vld [vmem:[%s3078_s3 + $0x480] sm:$0xff] }
  0x5f   :  { %1337 = vmatprep.subr.bf16.mxu0 %v1336_v9  ;;  %v430_v9 = vld [vmem:[%s3078_s3 + $0x300] sm:$0xff]  ;;  %1461 = vmatprep.subr.bf16.mxu1 %v1460_v2  ;;  %v444_v2 = vld [vmem:[%s3078_s3 + $0x370] sm:$0xff] }
  0x60   :  { %v1358_v18 = vpack.c.bf16 %v434_v10, %v430_v9  ;;  %v1490_v5 = vpack.c.bf16 %v444_v2, %v440_v1  ;;  %v455_v10 = vld [vmem:[%s3078_s3 + $0x3c8] sm:$0xff]  ;;  %v480_v2 = vld [vmem:[%s3078_s3 + $0x490] sm:$0xff]  ;;  %v510_v54 = vld [vmem:[%s3078_s3 + $0x580] sm:$0xff] }
  0x61   :  { %v514_v56 = vld [vmem:[%s3078_s3 + $0x5a0] sm:$0xff] }
  0x62   :  { %1339 = vmatpush1.bf16.msra.mxu0 %v1338_v19  ;;  %v1360_v19 = vpack.c.bf16 %v443_v13, %v439_v12  ;;  %1463 = vmatpush1.bf16.msra.mxu1 %v1462_v11  ;;  %v459_v11 = vld [vmem:[%s3078_s3 + $0x3e8] sm:$0xff]  ;;  %v457_v12 = vld [vmem:[%s3078_s3 + $0x3d8] sm:$0xff] }
  0x63   :  { %1341 = vmatprep.subr.bf16.mxu0 %v1340_v20  ;;  %v438_v20 = vld [vmem:[%s3078_s3 + $0x340] sm:$0xff]  ;;  %1465 = vmatprep.subr.bf16.mxu1 %v1464_v55  ;;  %v1368_v13 = vpack.c.bf16 %v459_v11, %v455_v10  ;;  %v461_v55 = vld [vmem:[%s3078_s3 + $0x3f8] sm:$0xff] }
  0x64   :  { %v1362_v30 = vpack.c.bf16 %v442_v21, %v438_v20  ;;  %v1496_v16 = vpack.c.bf16 %v461_v55, %v457_v12  ;;  %v463_v21 = vld [vmem:[%s3078_s3 + $0x408] sm:$0xff]  ;;  %v486_v10 = vld [vmem:[%s3078_s3 + $0x4c0] sm:$0xff]  ;;  %v488_v55 = vld [vmem:[%s3078_s3 + $0x4d0] sm:$0xff] }
  0x65   :  { %v490_v11 = vld [vmem:[%s3078_s3 + $0x4e0] sm:$0xff] }
  0x66   :  { %1343 = vmatpush1.bf16.msra.mxu0 %v1342_v31  ;;  %v1364_v31 = vpack.c.bf16 %v451_v24, %v447_v23  ;;  %1467 = vmatpush1.bf16.msra.mxu1 %v1466_v22  ;;  %v467_v22 = vld [vmem:[%s3078_s3 + $0x428] sm:$0xff]  ;;  %v465_v23 = vld [vmem:[%s3078_s3 + $0x418] sm:$0xff] }
  0x67   :  { %1345 = vmatprep.subr.bf16.mxu0 %v1344_v33  ;;  %v446_v33 = vld [vmem:[%s3078_s3 + $0x380] sm:$0xff]  ;;  %1469 = vmatprep.subr.bf16.mxu1 %v1468_v25  ;;  %v1372_v24 = vpack.c.bf16 %v467_v22, %v463_v21  ;;  %v469_v25 = vld [vmem:[%s3078_s3 + $0x438] sm:$0xff] }
  0x68   :  { %v1366_v43 = vpack.c.bf16 %v450_v34, %v446_v33  ;;  %v1500_v26 = vpack.c.bf16 %v469_v25, %v465_v23  ;;  %v466_v33 = vld [vmem:[%s3078_s3 + $0x420] sm:$0xff]  ;;  %v182_v23 = vsub.s32 3, %v1742_v32 }
  0x69   :  { %v494_v21 = vld [vmem:[%s3078_s3 + $0x500] sm:$0xff] }
  0x6a   :  { %1347 = vmatpush1.bf16.msra.mxu0 %v1346_v46  ;;  %1471 = vmatpush1.bf16.msra.mxu1 %v1470_v35  ;;  %v416_v46 = vld [vmem:[%s3078_s3 + $0x290] sm:$0xff]  ;;  %v498_v22 = vld [vmem:[%s3078_s3 + $0x520] sm:$0xff] }
  0x6b   :  { %1349 = vmatprep.subr.bf16.mxu0 %v1348_v47  ;;  %1473 = vmatprep.subr.bf16.mxu1 %v1472_v36  ;;  %v420_v47 = vld [vmem:[%s3078_s3 + $0x2b0] sm:$0xff] }
  0x6c   :  { %v1478_v51 = vpack.c.bf16 %v420_v47, %v416_v46  ;;  %v464_v36 = vld [vmem:[%s3078_s3 + $0x410] sm:$0xff] }
  0x6d   :  { %v1502_v47 = vpack.c.bf16 %v468_v37, %v464_v36  ;;  %v502_v36 = vld [vmem:[%s3078_s3 + $0x540] sm:$0xff] }
  0x6e   :  { %1351 = vmatpush1.bf16.msra.mxu0 %v1350_v49  ;;  %1475 = vmatpush1.bf16.msra.mxu1 %v1474_v44  ;;  %v432_v49 = vld [vmem:[%s3078_s3 + $0x310] sm:$0xff]  ;;  %v477_v44 = vld [vmem:[%s3078_s3 + $0x478] sm:$0xff]  ;;  %v506_v37 = vld [vmem:[%s3078_s3 + $0x560] sm:$0xff] }
  0x6f   :  { %1353 = vmatprep.subr.bf16.mxu0 %v1352_v60  ;;  %1477 = vmatprep.subr.bf16.mxu1 %v1476_v45  ;;  %v436_v60 = vld [vmem:[%s3078_s3 + $0x330] sm:$0xff] }
  0x70   :  { %v1486_v63 = vpack.c.bf16 %v436_v60, %v432_v49  ;;  %v485_v49 = vld [vmem:[%s3078_s3 + $0x4b8] sm:$0xff]  ;;  %v1378_v60 = vpack.c.bf16 %v474_v50, %v470_v48 }
  0x71   :  { %v517_v48 = vld [vmem:[%s3078_s3 + $0x5b8] sm:$0xff] }
  0x72   :  { %1355 = vmatpush1.bf16.msra.mxu0 %v1354_v7  ;;  %1479 = vmatpush1.bf16.msra.mxu1 %v1478_v51  ;;  %v448_v7 = vld [vmem:[%s3078_s3 + $0x390] sm:$0xff] }
  0x73   :  { %1357 = vmatprep.subr.bf16.mxu0 %v1356_v8  ;;  %1481 = vmatprep.subr.bf16.mxu1 %v1480_v52  ;;  %v452_v8 = vld [vmem:[%s3078_s3 + $0x3b0] sm:$0xff]  ;;  %v1376_v52 = vpack.c.bf16 %v475_v42, %v471_v38  ;;  %v183_v38 = vrot.slane %v2480_v27, %v182_v23 }
  0x74   :  { %v1494_v9 = vpack.c.bf16 %v452_v8, %v448_v7  ;;  %v493_v7 = vld [vmem:[%s3078_s3 + $0x4f8] sm:$0xff] }
  0x76   :  { %1359 = vmatpush1.bf16.msra.mxu0 %v1358_v18  ;;  %1483 = vmatpush1.bf16.msra.mxu1 %v1482_v58  ;;  %v456_v18 = vld [vmem:[%s3078_s3 + $0x3d0] sm:$0xff]  ;;  %v483_v58 = vld [vmem:[%s3078_s3 + $0x4a8] sm:$0xff] }
  0x77   :  { %1361 = vmatprep.subr.bf16.mxu0 %v1360_v19  ;;  %1485 = vmatprep.subr.bf16.mxu1 %v1484_v59  ;;  %v460_v19 = vld [vmem:[%s3078_s3 + $0x3f0] sm:$0xff]  ;;  %v481_v59 = vld [vmem:[%s3078_s3 + $0x498] sm:$0xff] }
  0x78   :  { %v1498_v20 = vpack.c.bf16 %v460_v19, %v456_v18  ;;  %v1508_v1 = vpack.c.bf16 %v485_v49, %v481_v59  ;;  %v501_v18 = vld [vmem:[%s3078_s3 + $0x538] sm:$0xff]  ;;  %v1386_v19 = vpack.c.bf16 %v490_v11, %v486_v10  ;;  %v512_v49 = vld [vmem:[%s3078_s3 + $0x590] sm:$0xff]  ;;  %v527_v10 = vld [vmem:[%s3078_s3 + $0x608] sm:$0xff] }
  0x79   :  { %v531_v11 = vld [vmem:[%s3078_s3 + $0x628] sm:$0xff] }
  0x7a   :  { %1363 = vmatpush1.bf16.msra.mxu0 %v1362_v30  ;;  %1487 = vmatpush1.bf16.msra.mxu1 %v1486_v63  ;;  %v482_v63 = vld [vmem:[%s3078_s3 + $0x4a0] sm:$0xff] }
  0x7b   :  { %1365 = vmatprep.subr.bf16.mxu0 %v1364_v31  ;;  %1489 = vmatprep.subr.bf16.mxu1 %v1488_v0  ;;  %v462_v31 = vld [vmem:[%s3078_s3 + $0x400] sm:$0xff]  ;;  %v1380_v0 = vpack.c.bf16 %v483_v58, %v479_v57  ;;  %v1382_v8 = vpack.c.bf16 %v482_v63, %v478_v62  ;;  %v523_v62 = vld [vmem:[%s3078_s3 + $0x5e8] sm:$0xff]  ;;  %v521_v63 = vld [vmem:[%s3078_s3 + $0x5d8] sm:$0xff] }
  0x7c   :  { %v1374_v46 = vpack.c.bf16 %v466_v33, %v462_v31  ;;  %v505_v31 = vld [vmem:[%s3078_s3 + $0x558] sm:$0xff] }
  0x7d   :  { %v509_v33 = vld [vmem:[%s3078_s3 + $0x578] sm:$0xff] }
  0x7e   :  { %1367 = vmatpush1.bf16.msra.mxu0 %v1366_v43  ;;  %1491 = vmatpush1.bf16.msra.mxu1 %v1490_v5  ;;  %v473_v43 = vld [vmem:[%s3078_s3 + $0x458] sm:$0xff]  ;;  %v491_v5 = vld [vmem:[%s3078_s3 + $0x4e8] sm:$0xff]  ;;  %v1520_v42 = vpack.c.bf16 %v509_v33, %v505_v31 }
  0x7f   :  { %1493 = vmatprep.subr.bf16.mxu1 %v1492_v6  ;;  %1369 = vmatprep.subr.bf16.mxu0 %v1368_v13  ;;  %v1504_v53 = vpack.c.bf16 %v477_v44, %v473_v43  ;;  %v489_v6 = vld [vmem:[%s3078_s3 + $0x4d8] sm:$0xff]  ;;  %v1384_v12 = vpack.c.bf16 %v491_v5, %v487_v4  ;;  %v504_v43 = vld [vmem:[%s3078_s3 + $0x550] sm:$0xff]  ;;  %v518_v4 = vld [vmem:[%s3078_s3 + $0x5c0] sm:$0xff] }
  0x80   :  { %v1512_v13 = vpack.c.bf16 %v493_v7, %v489_v6  ;;  %v508_v44 = vld [vmem:[%s3078_s3 + $0x570] sm:$0xff]  ;;  %v522_v5 = vld [vmem:[%s3078_s3 + $0x5e0] sm:$0xff] }
  0x82   :  { %1495 = vmatpush1.bf16.msra.mxu1 %v1494_v9  ;;  %1371 = vmatpush1.bf16.msra.mxu0 %v1370_v17  ;;  %v1510_v9 = vpack.c.bf16 %v484_v3, %v480_v2  ;;  %v497_v17 = vld [vmem:[%s3078_s3 + $0x518] sm:$0xff]  ;;  %v1398_v2 = vpack.c.bf16 %v514_v56, %v510_v54 }
  0x83   :  { %1497 = vmatprep.subr.bf16.mxu1 %v1496_v16  ;;  %1373 = vmatprep.subr.bf16.mxu0 %v1372_v24  ;;  %v499_v16 = vld [vmem:[%s3078_s3 + $0x528] sm:$0xff]  ;;  %v1516_v25 = vpack.c.bf16 %v501_v18, %v497_v17  ;;  %v1404_v17 = vpack.c.bf16 %v531_v11, %v527_v10  ;;  %v553_v54 = vld [vmem:[%s3078_s3 + $0x6d8] sm:$0xff]  ;;  %v560_v10 = vld [vmem:[%s3078_s3 + $0x710] sm:$0xff] }
  0x84   :  { %v1388_v24 = vpack.c.bf16 %v499_v16, %v495_v15  ;;  %v526_v15 = vld [vmem:[%s3078_s3 + $0x600] sm:$0xff]  ;;  %v557_v56 = vld [vmem:[%s3078_s3 + $0x6f8] sm:$0xff]  ;;  %v564_v11 = vld [vmem:[%s3078_s3 + $0x730] sm:$0xff] }
  0x85   :  { %v530_v16 = vld [vmem:[%s3078_s3 + $0x620] sm:$0xff] }
  0x86   :  { %1499 = vmatpush1.bf16.msra.mxu1 %v1498_v20  ;;  %v1514_v20 = vpack.c.bf16 %v492_v14, %v488_v55  ;;  %v1402_v55 = vpack.c.bf16 %v522_v5, %v518_v4 }
  0x87   :  { %1501 = vmatprep.subr.bf16.mxu1 %v1500_v26  ;;  %v496_v26 = vld [vmem:[%s3078_s3 + $0x510] sm:$0xff] }
 0x118   :  { %v254_v30 = vpop.f32.mrb[0].mxu0 }
 0x119   :  { %v255_v34 = vadd.f32 %v254_v30, %v171_v28  ;;  %v256_v35 = vpop.f32.mrb[1].mxu0  ;;  %v500_v28 = vld [vmem:[%s3078_s3 + $0x530] sm:$0xff]  ;;  %v507_v30 = vld [vmem:[%s3078_s3 + $0x568] sm:$0xff] }
 0x11a   :  { %v257_v40 = vadd.f32 %v256_v35, %v175_v29  ;;  %v503_v29 = vld [vmem:[%s3078_s3 + $0x548] sm:$0xff]  ;;  %v1518_v35 = vpack.c.bf16 %v500_v28, %v496_v26  ;;  %v1406_v26 = vpack.c.bf16 %v530_v16, %v526_v15  ;;  %v1550_v16 = vpack.c.bf16 %v564_v11, %v560_v10  ;;  %v903_v10 = vld [vmem:[%s3080_s5 + $0x18] sm:$0xff] }
 0x11b   :  { %v330_v51 = vmax.f32 %v255_v34, 0.0  ;;  %v1390_v34 = vpack.c.bf16 %v498_v22, %v494_v21  ;;  %v535_v21 = vld [vmem:[%s3078_s3 + $0x648] sm:$0xff] }
 0x11c   :  { %v331_v45 = vmax.f32 %v257_v40, 0.0  ;;  %v1392_v40 = vpack.c.bf16 %v507_v30, %v503_v29  ;;  %v2634_v50 = vpop.f32.mrb[0].mxu1  ;;  %v539_v22 = vld [vmem:[%s3078_s3 + $0x668] sm:$0xff]  ;;  %v534_v29 = vld [vmem:[%s3078_s3 + $0x640] sm:$0xff] }
 0x11d   :  { %v538_v30 = vld [vmem:[%s3078_s3 + $0x660] sm:$0xff]  ;;  %v1408_v31 = vpack.c.bf16 %v539_v22, %v535_v21  ;;  %v568_v21 = vld [vmem:[%s3078_s3 + $0x750] sm:$0xff] }
 0x11e   :  { %676 = vmatprep.mubr.f32.mxu0 %v331_v45  ;;  %818 = vmatprep.mubr.f32.mxu1 %v331_v45  ;;  %v511_v45 = vld [vmem:[%s3078_s3 + $0x588] sm:$0xff]  ;;  %v572_v22 = vld [vmem:[%s3078_s3 + $0x770] sm:$0xff] }
 0x11f   :  { %677 = vmatmul.mubr.f32.vlgmr.msra.gmra.mrb[2].mxu0 %v330_v51  ;;  %819 = vmatmul.mubr.f32.vlgmr.msra.gmra.mrb[2].mxu1 %v330_v51  ;;  %v327_v51 = vpop.f32.mrb[1].mxu1 }
 0x120   :  { %1375 = vmatpush1.bf16.msra.mxu0 %v1374_v46  ;;  %1503 = vmatpush1.bf16.msra.mxu1 %v1502_v47  ;;  %v515_v46 = vld [vmem:[%s3078_s3 + $0x5a8] sm:$0xff]  ;;  %v513_v47 = vld [vmem:[%s3078_s3 + $0x598] sm:$0xff]  ;;  %v328_v57 = vadd.f32 %v327_v51, %v183_v38  ;;  %v548_v51 = vld [vmem:[%s3078_s3 + $0x6b0] sm:$0xff] }
 0x121   :  { %1377 = vmatprep.subr.bf16.mxu0 %v1376_v52  ;;  %1505 = vmatprep.subr.bf16.mxu1 %v1504_v53  ;;  %v1394_v52 = vpack.c.bf16 %v506_v37, %v502_v36  ;;  %v1522_v53 = vpack.c.bf16 %v508_v44, %v504_v43  ;;  %v1396_v58 = vpack.c.bf16 %v515_v46, %v511_v45  ;;  %v543_v36 = vld [vmem:[%s3078_s3 + $0x688] sm:$0xff]  ;;  %v545_v38 = vld [vmem:[%s3078_s3 + $0x698] sm:$0xff]  ;;  %v542_v44 = vld [vmem:[%s3078_s3 + $0x680] sm:$0xff] }
 0x122   :  { %v1524_v59 = vpack.c.bf16 %v517_v48, %v513_v47  ;;  %v547_v37 = vld [vmem:[%s3078_s3 + $0x6a8] sm:$0xff]  ;;  %v546_v45 = vld [vmem:[%s3078_s3 + $0x6a0] sm:$0xff]  ;;  %v544_v48 = vld [vmem:[%s3078_s3 + $0x690] sm:$0xff] }
 0x123   :  { %v1412_v46 = vpack.c.bf16 %v547_v37, %v543_v36  ;;  %v576_v37 = vld [vmem:[%s3078_s3 + $0x790] sm:$0xff] }
 0x124   :  { %1379 = vmatpush1.bf16.msra.mxu0 %v1378_v60  ;;  %1507 = vmatpush1.bf16.msra.mxu1 %v1506_v61  ;;  %v516_v60 = vld [vmem:[%s3078_s3 + $0x5b0] sm:$0xff]  ;;  %v519_v61 = vld [vmem:[%s3078_s3 + $0x5c8] sm:$0xff] }
 0x125   :  { %1381 = vmatprep.subr.bf16.mxu0 %v1380_v0  ;;  %1509 = vmatprep.subr.bf16.mxu1 %v1508_v1  ;;  %v525_v0 = vld [vmem:[%s3078_s3 + $0x5f8] sm:$0xff]  ;;  %v333_v1 = vmax.f32 %v328_v57, 0.0  ;;  %v1526_v3 = vpack.c.bf16 %v516_v60, %v512_v49  ;;  %v1400_v6 = vpack.c.bf16 %v523_v62, %v519_v61  ;;  %v1414_v57 = vpack.c.bf16 %v546_v45, %v542_v44  ;;  %v554_v49 = vld [vmem:[%s3078_s3 + $0x6e0] sm:$0xff]  ;;  %v552_v62 = vld [vmem:[%s3078_s3 + $0x6d0] sm:$0xff] }
 0x126   :  { %v1528_v7 = vpack.c.bf16 %v525_v0, %v521_v63  ;;  %v1544_v61 = vpack.c.bf16 %v557_v56, %v553_v54  ;;  %v556_v63 = vld [vmem:[%s3078_s3 + $0x6f0] sm:$0xff]  ;;  %v559_v0 = vld [vmem:[%s3078_s3 + $0x708] sm:$0xff]  ;;  %v589_v44 = vld [vmem:[%s3078_s3 + $0x7f8] sm:$0xff] }
 0x127   :  { %747 = vmatprep.mubr.f32.mxu0 %v333_v1  ;;  %889 = vmatprep.mubr.f32.mxu1 %v333_v1  ;;  %v563_v1 = vld [vmem:[%s3078_s3 + $0x728] sm:$0xff]  ;;  %v1546_v5 = vpack.c.bf16 %v556_v63, %v552_v62  ;;  %v584_v54 = vld [vmem:[%s3078_s3 + $0x7d0] sm:$0xff] }
 0x128   :  { %1383 = vmatpush1.bf16.msra.mxu0 %v1382_v8  ;;  %1511 = vmatpush1.bf16.msra.mxu1 %v1510_v9  ;;  %v520_v8 = vld [vmem:[%s3078_s3 + $0x5d0] sm:$0xff]  ;;  %v901_v62 = vld [vmem:[%s3080_s5 + $0x8] sm:$0xff] }
 0x129   :  { %1385 = vmatprep.subr.bf16.mxu0 %v1384_v12  ;;  %1513 = vmatprep.subr.bf16.mxu1 %v1512_v13  ;;  %v524_v9 = vld [vmem:[%s3078_s3 + $0x5f0] sm:$0xff]  ;;  %v529_v12 = vld [vmem:[%s3078_s3 + $0x618] sm:$0xff] }
 0x12a   :  { %v533_v13 = vld [vmem:[%s3078_s3 + $0x638] sm:$0xff]  ;;  %v1530_v14 = vpack.c.bf16 %v524_v9, %v520_v8  ;;  %v1420_v8 = vpack.c.bf16 %v563_v1, %v559_v0  ;;  %v588_v56 = vld [vmem:[%s3078_s3 + $0x7f0] sm:$0xff] }
 0x12b   :  { %v1532_v18 = vpack.c.bf16 %v533_v13, %v529_v12  ;;  %v567_v12 = vld [vmem:[%s3078_s3 + $0x748] sm:$0xff] }
 0x12c   :  { %1387 = vmatpush1.bf16.msra.mxu0 %v1386_v19  ;;  %1515 = vmatpush1.bf16.msra.mxu1 %v1514_v20  ;;  %v528_v19 = vld [vmem:[%s3078_s3 + $0x610] sm:$0xff]  ;;  %v571_v13 = vld [vmem:[%s3078_s3 + $0x768] sm:$0xff] }
 0x12d   :  { %1389 = vmatprep.subr.bf16.mxu0 %v1388_v24  ;;  %1517 = vmatprep.subr.bf16.mxu1 %v1516_v25  ;;  %v532_v20 = vld [vmem:[%s3078_s3 + $0x630] sm:$0xff]  ;;  %v537_v24 = vld [vmem:[%s3078_s3 + $0x658] sm:$0xff] }
 0x12e   :  { %v541_v25 = vld [vmem:[%s3078_s3 + $0x678] sm:$0xff]  ;;  %v1534_v28 = vpack.c.bf16 %v532_v20, %v528_v19  ;;  %v1424_v19 = vpack.c.bf16 %v571_v13, %v567_v12 }
 0x12f   :  { %v1536_v33 = vpack.c.bf16 %v541_v25, %v537_v24  ;;  %v575_v24 = vld [vmem:[%s3078_s3 + $0x788] sm:$0xff] }
 0x130   :  { %1391 = vmatpush1.bf16.msra.mxu0 %v1390_v34  ;;  %1519 = vmatpush1.bf16.msra.mxu1 %v1518_v35  ;;  %v536_v34 = vld [vmem:[%s3078_s3 + $0x650] sm:$0xff]  ;;  %v579_v25 = vld [vmem:[%s3078_s3 + $0x7a8] sm:$0xff] }
 0x131   :  { %1393 = vmatprep.subr.bf16.mxu0 %v1392_v40  ;;  %1521 = vmatprep.subr.bf16.mxu1 %v1520_v42  ;;  %v540_v35 = vld [vmem:[%s3078_s3 + $0x670] sm:$0xff]  ;;  %v549_v40 = vld [vmem:[%s3078_s3 + $0x6b8] sm:$0xff]  ;;  %v1410_v42 = vpack.c.bf16 %v538_v30, %v534_v29  ;;  %v1554_v30 = vpack.c.bf16 %v572_v22, %v568_v21  ;;  %v904_v21 = vld [vmem:[%s3080_s5 + $0x20] sm:$0xff] }
 0x132   :  { %v1538_v43 = vpack.c.bf16 %v540_v35, %v536_v34  ;;  %v1540_v47 = vpack.c.bf16 %v549_v40, %v545_v38  ;;  %v178_v34 = vsub.s32 2, %v1742_v32  ;;  %v1428_v35 = vpack.c.bf16 %v579_v25, %v575_v24  ;;  %v580_v38 = vld [vmem:[%s3078_s3 + $0x7b0] sm:$0xff]  ;;  %v583_v40 = vld [vmem:[%s3078_s3 + $0x7c8] sm:$0xff]  ;;  %v964_v32 = vld [vmem:[%s3082_s6] sm:$0x1] }
 0x133   :  { %v905_v22 = vld [vmem:[%s3080_s5 + $0x28] sm:$0xff] }
 0x134   :  { %1395 = vmatpush1.bf16.msra.mxu0 %v1394_v52  ;;  %1523 = vmatpush1.bf16.msra.mxu1 %v1522_v53  ;;  %v551_v52 = vld [vmem:[%s3078_s3 + $0x6c8] sm:$0xff] }
 0x135   :  { %1397 = vmatprep.subr.bf16.mxu0 %v1396_v58  ;;  %1525 = vmatprep.subr.bf16.mxu1 %v1524_v59  ;;  %v555_v53 = vld [vmem:[%s3078_s3 + $0x6e8] sm:$0xff]  ;;  %v1542_v58 = vpack.c.bf16 %v548_v51, %v544_v48  ;;  %v550_v59 = vld [vmem:[%s3078_s3 + $0x6c0] sm:$0xff]  ;;  %v179_v51 = vrot.slane %v2480_v27, %v178_v34 }
 0x136   :  { %v1416_v60 = vpack.c.bf16 %v555_v53, %v551_v52  ;;  %v1418_v4 = vpack.c.bf16 %v554_v49, %v550_v59  ;;  %v586_v48 = vld [vmem:[%s3078_s3 + $0x7e0] sm:$0xff]  ;;  %v917_v27 = vld [vmem:[%s3080_s5 + $0x88] sm:$0xff] }
 0x137   :  { %v949_v59 = vld [vmem:[%s3080_s5 + $0x188] sm:$0xff]  ;;  %v326_v63 = vadd.f32 %v2634_v50, %v179_v51  ;;  %v919_v50 = vld [vmem:[%s3080_s5 + $0x98] sm:$0xff] }
 0x138   :  { %1399 = vmatpush1.bf16.msra.mxu0 %v1398_v2  ;;  %1527 = vmatpush1.bf16.msra.mxu1 %v1526_v3  ;;  %v561_v2 = vld [vmem:[%s3078_s3 + $0x718] sm:$0xff] }
 0x139   :  { %1401 = vmatprep.subr.bf16.mxu0 %v1400_v6  ;;  %1529 = vmatprep.subr.bf16.mxu1 %v1528_v7  ;;  %v565_v3 = vld [vmem:[%s3078_s3 + $0x738] sm:$0xff]  ;;  %v558_v6 = vld [vmem:[%s3078_s3 + $0x700] sm:$0xff]  ;;  %v332_v11 = vmax.f32 %v326_v63, 0.0 }
 0x13a   :  { %v562_v7 = vld [vmem:[%s3078_s3 + $0x720] sm:$0xff]  ;;  %v1548_v9 = vpack.c.bf16 %v565_v3, %v561_v2  ;;  %v933_v3 = vld [vmem:[%s3080_s5 + $0x108] sm:$0xff] }
 0x13b   :  { %v1422_v15 = vpack.c.bf16 %v562_v7, %v558_v6  ;;  %v932_v2 = vld [vmem:[%s3080_s5 + $0x100] sm:$0xff]  ;;  %v951_v6 = vld [vmem:[%s3080_s5 + $0x198] sm:$0xff] }
 0x13c   :  { %1403 = vmatpush1.bf16.msra.mxu0 %v1402_v55  ;;  %1531 = vmatpush1.bf16.msra.mxu1 %v1530_v14  ;;  %v569_v55 = vld [vmem:[%s3078_s3 + $0x758] sm:$0xff] }
 0x13d   :  { %1405 = vmatprep.subr.bf16.mxu0 %v1404_v17  ;;  %1533 = vmatprep.subr.bf16.mxu1 %v1532_v18  ;;  %v573_v14 = vld [vmem:[%s3078_s3 + $0x778] sm:$0xff]  ;;  %v566_v17 = vld [vmem:[%s3078_s3 + $0x740] sm:$0xff] }
 0x13e   :  { %v570_v18 = vld [vmem:[%s3078_s3 + $0x760] sm:$0xff]  ;;  %v1552_v20 = vpack.c.bf16 %v573_v14, %v569_v55  ;;  %v934_v55 = vld [vmem:[%s3080_s5 + $0x110] sm:$0xff]  ;;  %v935_v14 = vld [vmem:[%s3080_s5 + $0x118] sm:$0xff] }
 0x13f   :  { %v1426_v29 = vpack.c.bf16 %v570_v18, %v566_v17  ;;  %v952_v17 = vld [vmem:[%s3080_s5 + $0x1a0] sm:$0xff]  ;;  %v953_v18 = vld [vmem:[%s3080_s5 + $0x1a8] sm:$0xff] }
 0x140   :  { %1407 = vmatpush1.bf16.msra.mxu0 %v1406_v26  ;;  %1535 = vmatpush1.bf16.msra.mxu1 %v1534_v28  ;;  %v577_v26 = vld [vmem:[%s3078_s3 + $0x798] sm:$0xff]  ;;  %v1604_v25 = vpack.c.bf16 %v953_v18, %v952_v17  ;;  %v930_v18 = vld [vmem:[%s3080_s5 + $0xf0] sm:$0xff] }
 0x141   :  { %1409 = vmatprep.subr.bf16.mxu0 %v1408_v31  ;;  %1537 = vmatprep.subr.bf16.mxu1 %v1536_v33  ;;  %v581_v28 = vld [vmem:[%s3078_s3 + $0x7b8] sm:$0xff]  ;;  %v574_v31 = vld [vmem:[%s3078_s3 + $0x780] sm:$0xff] }
 0x142   :  { %v578_v33 = vld [vmem:[%s3078_s3 + $0x7a0] sm:$0xff]  ;;  %v1556_v36 = vpack.c.bf16 %v581_v28, %v577_v26  ;;  %v937_v28 = vld [vmem:[%s3080_s5 + $0x128] sm:$0xff] }
 0x143   :  { %v1430_v45 = vpack.c.bf16 %v578_v33, %v574_v31  ;;  %v936_v26 = vld [vmem:[%s3080_s5 + $0x120] sm:$0xff]  ;;  %v954_v31 = vld [vmem:[%s3080_s5 + $0x1b0] sm:$0xff]  ;;  %v955_v33 = vld [vmem:[%s3080_s5 + $0x1b8] sm:$0xff] }
 0x144   :  { %1411 = vmatpush1.bf16.msra.mxu0 %v1410_v42  ;;  %1539 = vmatpush1.bf16.msra.mxu1 %v1538_v43  ;;  %v587_v42 = vld [vmem:[%s3078_s3 + $0x7e8] sm:$0xff]  ;;  %v585_v43 = vld [vmem:[%s3078_s3 + $0x7d8] sm:$0xff] }
 0x145   :  { %1413 = vmatprep.subr.bf16.mxu0 %v1412_v46  ;;  %1541 = vmatprep.subr.bf16.mxu1 %v1540_v47  ;;  %v1558_v46 = vpack.c.bf16 %v580_v38, %v576_v37  ;;  %v582_v47 = vld [vmem:[%s3078_s3 + $0x7c0] sm:$0xff]  ;;  %v1432_v52 = vpack.c.bf16 %v587_v42, %v583_v40  ;;  %v1560_v53 = vpack.c.bf16 %v589_v44, %v585_v43  ;;  %v906_v37 = vld [vmem:[%s3080_s5 + $0x30] sm:$0xff]  ;;  %v907_v38 = vld [vmem:[%s3080_s5 + $0x38] sm:$0xff] }
 0x146   :  { %v1434_v49 = vpack.c.bf16 %v586_v48, %v582_v47  ;;  %v1608_v42 = vpack.c.bf16 %v955_v33, %v954_v31  ;;  %v938_v43 = vld [vmem:[%s3080_s5 + $0x130] sm:$0xff]  ;;  %v939_v44 = vld [vmem:[%s3080_s5 + $0x138] sm:$0xff]  ;;  %v956_v47 = vld [vmem:[%s3080_s5 + $0x1c0] sm:$0xff]  ;;  %v1578_v51 = vpack.c.bf16 %v907_v38, %v906_v37 }
 0x147   :  { %v957_v48 = vld [vmem:[%s3080_s5 + $0x1c8] sm:$0xff]  ;;  %v590_v33 = vld [vmem:[%s3081_s4] sm:$0xf] }
 0x148   :  { %1415 = vmatpush1.bf16.msra.mxu0 %v1414_v57  ;;  %1543 = vmatpush1.bf16.msra.mxu1 %v1542_v58  ;;  %v916_v57 = vld [vmem:[%s3080_s5 + $0x80] sm:$0xff]  ;;  %v599_v37 = vrot.slane %v590_v33, %v1757_v39  ;;  %v607_v38 = vrot.slane %v590_v33, %v182_v23 }
 0x149   :  { %1417 = vmatprep.subr.bf16.mxu0 %v1416_v60  ;;  %1545 = vmatprep.subr.bf16.mxu1 %v1544_v61  ;;  %v948_v58 = vld [vmem:[%s3080_s5 + $0x180] sm:$0xff]  ;;  %v1562_v60 = vpack.c.bf16 %v588_v56, %v584_v54  ;;  %v1564_v0 = vpack.c.bf16 %v917_v27, %v916_v57  ;;  %v909_v54 = vld [vmem:[%s3080_s5 + $0x48] sm:$0xff]  ;;  %v1612_v57 = vpack.c.bf16 %v957_v48, %v956_v47 }
 0x14a   :  { %v900_v61 = vld [vmem:[%s3080_s5] sm:$0xff]  ;;  %v1596_v1 = vpack.c.bf16 %v949_v59, %v948_v58  ;;  %v941_v58 = vld [vmem:[%s3080_s5 + $0x148] sm:$0xff]  ;;  %v926_v59 = vld [vmem:[%s3080_s5 + $0xd0] sm:$0xff] }
 0x14b   :  { %v1566_v7 = vpack.c.bf16 %v901_v62, %v900_v61  ;;  %v940_v27 = vld [vmem:[%s3080_s5 + $0x140] sm:$0xff]  ;;  %v959_v61 = vld [vmem:[%s3080_s5 + $0x1d8] sm:$0xff] }
 0x14c   :  { %1419 = vmatpush1.bf16.msra.mxu0 %v1418_v4  ;;  %1547 = vmatpush1.bf16.msra.mxu1 %v1546_v5  ;;  %v918_v4 = vld [vmem:[%s3080_s5 + $0x90] sm:$0xff]  ;;  %v1614_v63 = vpack.c.bf16 %v941_v58, %v940_v27 }
 0x14d   :  { %1421 = vmatprep.subr.bf16.mxu0 %v1420_v8  ;;  %1549 = vmatprep.subr.bf16.mxu1 %v1548_v9  ;;  %v950_v5 = vld [vmem:[%s3080_s5 + $0x190] sm:$0xff]  ;;  %v1598_v8 = vpack.c.bf16 %v933_v3, %v932_v2  ;;  %v1568_v12 = vpack.c.bf16 %v919_v50, %v918_v4  ;;  %v943_v50 = vld [vmem:[%s3080_s5 + $0x158] sm:$0xff] }
 0x14e   :  { %v902_v9 = vld [vmem:[%s3080_s5 + $0x10] sm:$0xff]  ;;  %v1600_v13 = vpack.c.bf16 %v951_v6, %v950_v5  ;;  %v928_v5 = vld [vmem:[%s3080_s5 + $0xe0] sm:$0xff]  ;;  %v929_v6 = vld [vmem:[%s3080_s5 + $0xe8] sm:$0xff] }
 0x14f   :  { %v942_v4 = vld [vmem:[%s3080_s5 + $0x150] sm:$0xff] }
 0x150   :  { %1423 = vmatpush1.bf16.msra.mxu0 %v1422_v15  ;;  %1551 = vmatpush1.bf16.msra.mxu1 %v1550_v16  ;;  %v920_v15 = vld [vmem:[%s3080_s5 + $0xa0] sm:$0xff]  ;;  %v921_v16 = vld [vmem:[%s3080_s5 + $0xa8] sm:$0xff] }
 0x151   :  { %1425 = vmatprep.subr.bf16.mxu0 %v1424_v19  ;;  %1553 = vmatprep.subr.bf16.mxu1 %v1552_v20  ;;  %v1570_v19 = vpack.c.bf16 %v903_v10, %v902_v9  ;;  %v1602_v20 = vpack.c.bf16 %v935_v14, %v934_v55  ;;  %v1572_v24 = vpack.c.bf16 %v921_v16, %v920_v15  ;;  %v913_v55 = vld [vmem:[%s3080_s5 + $0x68] sm:$0xff]  ;;  %v944_v14 = vld [vmem:[%s3080_s5 + $0x160] sm:$0xff] }
 0x152   :  { %v1618_v10 = vpack.c.bf16 %v943_v50, %v942_v4  ;;  %v945_v16 = vld [vmem:[%s3080_s5 + $0x168] sm:$0xff] }
 0x153   :  { %v1622_v17 = vpack.c.bf16 %v945_v16, %v944_v14 }
 0x154   :  { %1427 = vmatpush1.bf16.msra.mxu0 %v1426_v29  ;;  %1555 = vmatpush1.bf16.msra.mxu1 %v1554_v30  ;;  %v922_v29 = vld [vmem:[%s3080_s5 + $0xb0] sm:$0xff]  ;;  %v923_v30 = vld [vmem:[%s3080_s5 + $0xb8] sm:$0xff] }
 0x155   :  { %1429 = vmatprep.subr.bf16.mxu0 %v1428_v35  ;;  %1557 = vmatprep.subr.bf16.mxu1 %v1556_v36  ;;  %v1574_v35 = vpack.c.bf16 %v905_v22, %v904_v21  ;;  %v1606_v36 = vpack.c.bf16 %v937_v28, %v936_v26  ;;  %v1576_v40 = vpack.c.bf16 %v923_v30, %v922_v29  ;;  %v963_v22 = vld [vmem:[%s3080_s5 + $0x1f8] sm:$0xff]  ;;  %v946_v29 = vld [vmem:[%s3080_s5 + $0x170] sm:$0xff] }
 0x156   :  { %v947_v30 = vld [vmem:[%s3080_s5 + $0x178] sm:$0xff] }
 0x157   :  { %v1626_v31 = vpack.c.bf16 %v947_v30, %v946_v29 }
 0x158   :  { %1431 = vmatpush1.bf16.msra.mxu0 %v1430_v45  ;;  %1559 = vmatpush1.bf16.msra.mxu1 %v1558_v46  ;;  %v924_v45 = vld [vmem:[%s3080_s5 + $0xc0] sm:$0xff]  ;;  %v925_v46 = vld [vmem:[%s3080_s5 + $0xc8] sm:$0xff] }
 0x159   :  { %1433 = vmatprep.subr.bf16.mxu0 %v1432_v52  ;;  %1561 = vmatprep.subr.bf16.mxu1 %v1560_v53  ;;  %v1610_v52 = vpack.c.bf16 %v939_v44, %v938_v43  ;;  %v908_v53 = vld [vmem:[%s3080_s5 + $0x40] sm:$0xff]  ;;  %v1580_v56 = vpack.c.bf16 %v925_v46, %v924_v45 }
 0x15a   :  { %v1582_v62 = vpack.c.bf16 %v909_v54, %v908_v53 }
 0x15c   :  { %1435 = vmatpush1.bf16.msra.mxu0 %v1434_v49  ;;  %1563 = vmatpush1.bf16.msra.mxu1 %v1562_v60  ;;  %v927_v49 = vld [vmem:[%s3080_s5 + $0xd8] sm:$0xff]  ;;  %v958_v60 = vld [vmem:[%s3080_s5 + $0x1d0] sm:$0xff] }
 0x15d   :  { %1565 = vmatprep.subr.bf16.mxu0 %v1564_v0  ;;  %1597 = vmatprep.subr.bf16.mxu1 %v1596_v1  ;;  %v910_v0 = vld [vmem:[%s3080_s5 + $0x50] sm:$0xff]  ;;  %v911_v1 = vld [vmem:[%s3080_s5 + $0x58] sm:$0xff]  ;;  %v1584_v2 = vpack.c.bf16 %v927_v49, %v926_v59  ;;  %v1616_v3 = vpack.c.bf16 %v959_v61, %v958_v60 }
 0x15e   :  { %v1586_v9 = vpack.c.bf16 %v911_v1, %v910_v0 }
 0x15f   :  { %748 = vmatmul.mubr.f32.vlgmr.msra.gmra.mrb[2].mxu0 %v332_v11  ;;  %890 = vmatmul.mubr.f32.vlgmr.msra.gmra.mrb[2].mxu1 %v332_v11  ;;  %v1588_v11 = vpack.c.bf16 %v929_v6, %v928_v5 }
 0x160   :  { %1567 = vmatpush3.bf16.msra.mxu0 %v1566_v7  ;;  %1599 = vmatpush3.bf16.msra.mxu1 %v1598_v8  ;;  %v960_v7 = vld [vmem:[%s3080_s5 + $0x1e0] sm:$0xff]  ;;  %v961_v8 = vld [vmem:[%s3080_s5 + $0x1e8] sm:$0xff] }
 0x161   :  { %1569 = vmatprep.subr.bf16.mxu0 %v1568_v12  ;;  %1601 = vmatprep.subr.bf16.mxu1 %v1600_v13  ;;  %v1620_v12 = vpack.c.bf16 %v961_v8, %v960_v7  ;;  %v912_v13 = vld [vmem:[%s3080_s5 + $0x60] sm:$0xff] }
 0x162   :  { %v1590_v15 = vpack.c.bf16 %v913_v55, %v912_v13 }
 0x164   :  { %1571 = vmatpush3.bf16.msra.mxu0 %v1570_v19  ;;  %1603 = vmatpush3.bf16.msra.mxu1 %v1602_v20  ;;  %v931_v19 = vld [vmem:[%s3080_s5 + $0xf8] sm:$0xff]  ;;  %v962_v20 = vld [vmem:[%s3080_s5 + $0x1f0] sm:$0xff] }
 0x165   :  { %1573 = vmatprep.subr.bf16.mxu0 %v1572_v24  ;;  %1605 = vmatprep.subr.bf16.mxu1 %v1604_v25  ;;  %v1592_v21 = vpack.c.bf16 %v931_v19, %v930_v18  ;;  %v914_v24 = vld [vmem:[%s3080_s5 + $0x70] sm:$0xff]  ;;  %v915_v25 = vld [vmem:[%s3080_s5 + $0x78] sm:$0xff]  ;;  %v1624_v26 = vpack.c.bf16 %v963_v22, %v962_v20 }
 0x166   :  { %v1594_v28 = vpack.c.bf16 %v915_v25, %v914_v24 }
 0x168   :  { %1575 = vmatpush3.bf16.msra.mxu0 %v1574_v35  ;;  %1607 = vmatpush3.bf16.msra.mxu1 %v1606_v36  ;;  %v595_v35 = vrot.slane %v590_v33, %v2013_v41  ;;  %v603_v36 = vrot.slane %v590_v33, %v178_v34 }
 0x169   :  { %1577 = vmatprep.subr.bf16.mxu0 %v1576_v40  ;;  %1609 = vmatprep.subr.bf16.mxu1 %v1608_v42 }
 0x16c   :  { %1579 = vmatpush3.bf16.msra.mxu0 %v1578_v51  ;;  %1611 = vmatpush3.bf16.msra.mxu1 %v1610_v52 }
 0x16d   :  { %1581 = vmatprep.subr.bf16.mxu0 %v1580_v56  ;;  %1613 = vmatprep.subr.bf16.mxu1 %v1612_v57 }
 0x170   :  { %1583 = vmatpush3.bf16.msra.mxu0 %v1582_v62  ;;  %1615 = vmatpush3.bf16.msra.mxu1 %v1614_v63 }
 0x171   :  { %1585 = vmatprep.subr.bf16.mxu0 %v1584_v2  ;;  %1617 = vmatprep.subr.bf16.mxu1 %v1616_v3 }
 0x174   :  { %1587 = vmatpush3.bf16.msra.mxu0 %v1586_v9  ;;  %1619 = vmatpush3.bf16.msra.mxu1 %v1618_v10 }
 0x175   :  { %1589 = vmatprep.subr.bf16.mxu0 %v1588_v11  ;;  %1621 = vmatprep.subr.bf16.mxu1 %v1620_v12 }
 0x178   :  { %1591 = vmatpush3.bf16.msra.mxu0 %v1590_v15  ;;  %1623 = vmatpush3.bf16.msra.mxu1 %v1622_v17 }
 0x179   :  { %1593 = vmatprep.subr.bf16.mxu0 %v1592_v21  ;;  %1625 = vmatprep.subr.bf16.mxu1 %v1624_v26 }
 0x17c   :  { %1595 = vmatpush3.bf16.msra.mxu0 %v1594_v28  ;;  %1627 = vmatpush3.bf16.msra.mxu1 %v1626_v31 }
 0x232   :  { %v749_v40 = vpop.f32.mrb[2].mxu0  ;;  %v891_v42 = vpop.f32.mrb[2].mxu1 }
 0x233   :  { %v1628_v43 = vadd.f32 %v749_v40, %v595_v35  ;;  %v1630_v44 = vadd.f32 %v891_v42, %v603_v36  ;;  %v751_v45 = vpop.f32.mrb[3].mxu0  ;;  %v893_v46 = vpop.f32.mrb[3].mxu1 }
 0x234   :  { %v1629_v47 = vadd.f32 %v751_v45, %v599_v37  ;;  %v1631_v48 = vadd.f32 %v893_v46, %v607_v38 }
 0x235   :  { %v896_v53 = vmax.f32 %v1628_v43, 0.0  ;;  %v898_v41 = vmax.f32 %v1630_v44, 0.0 }
 0x236   :  { %v897_v51 = vmax.f32 %v1629_v47, 0.0  ;;  %v899_v52 = vmax.f32 %v1631_v48, 0.0 }
 0x238   :  { %1029 = vmatprep.mubr.f32.mxu0 %v897_v51  ;;  %1099 = vmatprep.mubr.f32.mxu1 %v899_v52 }
 0x239   :  { %1030 = vmatmul.mubr.f32.vlgmr.msra.gmra.mrb[4].mxu0 %v896_v53  ;;  %1100 = vmatmul.mubr.f32.vlgmr.msra.gmra.mrb[4].mxu1 %v898_v41 }
 0x30c   :  { %v1142_v39 = vpop.f32.mrb[4].mxu0  ;;  %v1177_v34 = vpop.f32.mrb[4].mxu1 }
 0x30d   :  { %v1143_v23 = vpop.f32.mrb[5].mxu0  ;;  %v1178_v54 = vpop.f32.mrb[5].mxu1 }
 0x30e   :  { %v1144_v56 = vadd.f32 %v1143_v23, %v1142_v39  ;;  %v1179_v57 = vadd.f32 %v1178_v54, %v1177_v34 }
 0x310   :  { %v1032_v27 = vadd.f32 %v1144_v56, %v964_v32 }
 0x312   :  { %v1102_v58 = vadd.f32 %v1179_v57, %v1032_v27 }
 0x314   :  { %1105 = vst [vmem:[%s3083_s7] sm:$0x1] %v1102_v58 }

</bundles_post_ra>
